<compile_context>
chip_gen: v5e
topology: v5e:2x2
jax: 0.10.0
libtpu: 0.0.40
codegen_flags: <defaults>
</compile_context>

<pallas_src>
import math
import jax
import jax.numpy as jnp
from jax import lax
from jax.experimental import pallas as pl
from jax.experimental.pallas import tpu as pltpu


# ---------------------------------------------------------------------------
# Pallas kernels (channels-first: the huge B*H*W axis sits on TPU lanes)
# ---------------------------------------------------------------------------

def _mm_bias_kernel(x_ref, w_ref, b_ref, o_ref):
    # x_ref: (1, K, TM), w_ref: (N, K), b_ref: (N, 1), o_ref: (1, N, TM)
    acc = jnp.dot(w_ref[...], x_ref[0], preferred_element_type=jnp.float32)
    o_ref[0] = acc + b_ref[...]


def _gate_kernel(c3_ref, c1_ref, x_ref, w2_ref, w4_ref, b_ref, o_ref):
    # conv4(conv_f(c1) + c3sum) with conv_f folded into conv4:
    #   c4 = (w4 @ wf) @ c1 + w4 @ c3sum + (w4 @ bf + b4)
    # The two dots are independent (no MXU->FIFO->MXU serial chain).
    c4 = (jnp.dot(w2_ref[...], c1_ref[0], preferred_element_type=jnp.float32)
          + jnp.dot(w4_ref[...], c3_ref[0], preferred_element_type=jnp.float32)
          + b_ref[...])
    o_ref[0] = x_ref[0] * jax.nn.sigmoid(c4)


# ---------------------------------------------------------------------------
# Tiling helpers / Pallas wrappers
# ---------------------------------------------------------------------------

# Largest spatial tile. Per-step VMEM at this cap stays far below even v5e's
# 16 MiB default scoped VMEM at these channel counts; if num_feat / the cap is
# scaled up, add vmem_limit_bytes via pltpu.CompilerParams.
_TM_CAP = 4096


def _pick_tile(m, batch):
    """Choose (lane_tile, padded_m) for the spatial axis.

    Goals (perf review):
      * fewest possible grid steps (per-step overhead dominates at this size),
      * >= 2 total 'parallel' steps so both v7x TensorCores get work,
      * no padding when a single full-extent tile fits under the cap,
      * otherwise pad m up to a multiple of the chosen tile (minimal padding).
    """
    min_tiles = 1 if batch >= 2 else 2
    if min_tiles == 1 and m <= _TM_CAP:
        return m, m                                    # one full-extent tile / batch
    m128 = -(-m // 128) * 128                          # lane-align before splitting
    limit = min(_TM_CAP, max(128, (m128 // min_tiles) // 128 * 128))
    best_t, best_pad = 128, m128
    for t in range(128, limit + 1, 128):
        pad = -(-m128 // t) * t
        if pad < best_pad or (pad == best_pad and t > best_t):
            best_t, best_pad = t, pad
    return best_t, best_pad


def pallas_matmul_bias_cf(x, w, b, compute_dtype=jnp.float32):
    """Channels-first matmul+bias: out[bi] = w @ x[bi] + b.

    x: (B, K, M), w: (N, K), b: (N,) -> (B, N, M) f32.
    """
    B, K, M = x.shape
    N = w.shape[0]
    tm, m_pad = _pick_tile(M, B)
    if m_pad != M:
        x = jnp.pad(x, ((0, 0), (0, 0), (0, m_pad - M)))
    if x.dtype != compute_dtype:
        x = x.astype(compute_dtype)
    w = w.astype(compute_dtype)
    out = pl.pallas_call(
        _mm_bias_kernel,
        out_shape=jax.ShapeDtypeStruct((B, N, m_pad), jnp.float32),
        grid=(B, m_pad // tm),
        in_specs=[
            pl.BlockSpec((1, K, tm), lambda bi, ti: (bi, 0, ti)),
            pl.BlockSpec((N, K), lambda bi, ti: (0, 0)),
            pl.BlockSpec((N, 1), lambda bi, ti: (0, 0)),
        ],
        out_specs=pl.BlockSpec((1, N, tm), lambda bi, ti: (bi, 0, ti)),
        compiler_params=pltpu.CompilerParams(
            dimension_semantics=("parallel", "parallel")),
    )(x, w, b.reshape(N, 1).astype(jnp.float32))
    if m_pad != M:
        out = out[:, :, :M]
    return out


def pallas_gate_cf(c3sum, c1, x, w2, w4, b, compute_dtype=jnp.float32):
    """Fused (folded conv_f/conv4) + sigmoid + gating.

    c3sum/c1: (B, f, M), x: (B, C, M) f32, w2 = w4@wf: (C, f), w4: (C, f),
    b = w4@bf + b4: (C,) -> (B, C, M) f32. x stays f32 (aliased with output).
    """
    B, f, M = c1.shape
    C = x.shape[1]
    tm, m_pad = _pick_tile(M, B)
    if m_pad != M:
        pad = ((0, 0), (0, 0), (0, m_pad - M))
        c3sum = jnp.pad(c3sum, pad)
        c1 = jnp.pad(c1, pad)
        x = jnp.pad(x, pad)
    if c1.dtype != compute_dtype:
        c1 = c1.astype(compute_dtype)
        c3sum = c3sum.astype(compute_dtype)
    w2 = w2.astype(compute_dtype)
    w4 = w4.astype(compute_dtype)
    out = pl.pallas_call(
        _gate_kernel,
        out_shape=jax.ShapeDtypeStruct((B, C, m_pad), jnp.float32),
        grid=(B, m_pad // tm),
        in_specs=[
            pl.BlockSpec((1, f, tm), lambda bi, ti: (bi, 0, ti)),
            pl.BlockSpec((1, f, tm), lambda bi, ti: (bi, 0, ti)),
            pl.BlockSpec((1, C, tm), lambda bi, ti: (bi, 0, ti)),
            pl.BlockSpec((C, f), lambda bi, ti: (0, 0)),
            pl.BlockSpec((C, f), lambda bi, ti: (0, 0)),
            pl.BlockSpec((C, 1), lambda bi, ti: (0, 0)),
        ],
        out_specs=pl.BlockSpec((1, C, tm), lambda bi, ti: (bi, 0, ti)),
        # x (input 2) and the output share shape/dtype; aliasing saves a
        # full-resolution HBM allocation + write-allocate when x is donated.
        input_output_aliases={2: 0},
        compiler_params=pltpu.CompilerParams(
            dimension_semantics=("parallel", "parallel")),
    )(c3sum, c1, x, w2, w4, b.reshape(C, 1).astype(jnp.float32))
    if m_pad != M:
        out = out[:, :, :M]
    return out


# ---------------------------------------------------------------------------
# JAX glue (layout plumbing around the Pallas kernels; tiny tensors only)
# ---------------------------------------------------------------------------

def _extract_windows(x, ksize, stride):
    """x: (B, C, Hp, Wp) already padded -> list of k*k strided slices (B,C,Ho,Wo)."""
    Hp, Wp = x.shape[2], x.shape[3]
    Ho = (Hp - ksize) // stride + 1
    Wo = (Wp - ksize) // stride + 1
    slices = []
    for di in range(ksize):
        for dj in range(ksize):
            slices.append(
                x[:, :, di:di + stride * (Ho - 1) + 1:stride,
                        dj:dj + stride * (Wo - 1) + 1:stride])
    return slices, Ho, Wo


def _im2col_cf(x, ksize, stride, padding=0, pad_mode="constant"):
    """(B, C, H, W) -> patches (B, C*k*k, Ho*Wo) channels-first (no transposes)."""
    B, C = x.shape[0], x.shape[1]
    if padding > 0:
        x = jnp.pad(x, ((0, 0), (0, 0), (padding, padding), (padding, padding)),
                    mode=pad_mode)
    slices, Ho, Wo = _extract_windows(x, ksize, stride)
    P = jnp.stack(slices, axis=2)                      # (B, C, k*k, Ho, Wo)
    return P.reshape(B, C * ksize * ksize, Ho * Wo), Ho, Wo


def conv2d_xla(x, w, b):
    """Tiny post-pool 3x3 'valid' convs: left to XLA per the perf review
    (Pallas launch overhead exceeds compute on 8x8 / 7x7 maps)."""
    y = lax.conv_general_dilated(
        x, w, window_strides=(1, 1), padding="VALID",
        dimension_numbers=("NCHW", "OIHW", "NCHW"))
    return y + b.reshape(1, -1, 1, 1)


def maxpool2d(x, ksize, stride, padding):
    """PyTorch MaxPool2d semantics (floor mode, -inf padding)."""
    if padding > 0:
        x = jnp.pad(x, ((0, 0), (0, 0), (padding, padding), (padding, padding)),
                    constant_values=-jnp.inf)
    slices, _, _ = _extract_windows(x, ksize, stride)
    out = slices[0]
    for s in slices[1:]:
        out = jnp.maximum(out, s)
    return out


def get_local_weights(residual, ksize, padding):
    """Reflect-pad, unfold(ksize, stride=3) twice, unbiased variance per window."""
    x = jnp.pad(residual, ((0, 0), (0, 0), (padding, padding), (padding, padding)),
                mode="reflect")
    slices, _, _ = _extract_windows(x, ksize, 3)
    W = jnp.stack(slices, axis=-1)                     # (B, C, Ho, Wo, k*k)
    return jnp.var(W, axis=-1, ddof=1)


def bilinear_resize(x, out_h, out_w):
    """F.interpolate(..., mode='bilinear', align_corners=False) for NCHW."""
    B, C, H, W = x.shape

    def idx_weights(out_size, in_size):
        scale = in_size / out_size
        i = jnp.arange(out_size, dtype=jnp.float32)
        src = jnp.maximum(scale * (i + 0.5) - 0.5, 0.0)
        i0 = jnp.minimum(jnp.floor(src).astype(jnp.int32), in_size - 1)
        i1 = jnp.minimum(i0 + 1, in_size - 1)
        w1 = src - i0.astype(jnp.float32)
        return i0, i1, 1.0 - w1, w1

    y0, y1, wy0, wy1 = idx_weights(out_h, H)
    x0, x1, wx0, wx1 = idx_weights(out_w, W)
    top = x[:, :, y0, :]
    bot = x[:, :, y1, :]
    rows = top * wy0[None, None, :, None] + bot * wy1[None, None, :, None]
    left = rows[:, :, :, x0]
    right = rows[:, :, :, x1]
    return left * wx0[None, None, None, :] + right * wx1[None, None, None, :]


def gelu_exact(x):
    # nn.GELU() default is the exact erf formulation.
    return jax.nn.gelu(x, approximate=False)


# ---------------------------------------------------------------------------
# ESA forward
# ---------------------------------------------------------------------------

def esa_forward(x, p, compute_dtype=jnp.float32):
    B, C, H, W = x.shape
    f = p["conv1_w"].shape[0]
    HW = H * W
    x_flat = x.reshape(B, C, HW)

    # conv1 (1x1): full-res, channels-first Pallas matmul (lane-dense output).
    c1_flat = pallas_matmul_bias_cf(x_flat, p["conv1_w"].reshape(f, C),
                                    p["conv1_b"], compute_dtype)
    c1_ = c1_flat.reshape(B, f, H, W)

    # conv2_0..3 (3x3, stride 2, reflect pad) batched into ONE Pallas matmul:
    # one im2col, one call, N = 4f output channels.
    # TODO(synk): accumulate the 9 stride-2 taps inside the matmul kernel
    # (polyphase-split c1_ so only unit-stride in-kernel slices are needed) to
    # drop the im2col HBM round trip; deferred pending verification of Mosaic
    # strided-slice lowering.
    patches, Ho, Wo = _im2col_cf(c1_, 3, 2, padding=1, pad_mode="reflect")
    w_cat = jnp.concatenate(
        [p["conv2_0_w"], p["conv2_1_w"], p["conv2_2_w"], p["conv2_3_w"]],
        axis=0).reshape(4 * f, f * 9)
    b_cat = jnp.concatenate(
        [p["conv2_0_b"], p["conv2_1_b"], p["conv2_2_b"], p["conv2_3_b"]])
    conv2_out = pallas_matmul_bias_cf(patches, w_cat, b_cat,
                                      compute_dtype).reshape(B, 4 * f, Ho, Wo)
    t0 = conv2_out[:, 0 * f:1 * f]
    t1 = conv2_out[:, 1 * f:2 * f]
    t2 = conv2_out[:, 2 * f:3 * f]
    t3 = conv2_out[:, 3 * f:4 * f]

    c1_0 = maxpool2d(t0, 3, 3, 1)
    c1_1 = maxpool2d(t1, 5, 3, 0)
    c1_2 = maxpool2d(t2, 7, 3, 1)
    c1_3 = get_local_weights(t3, 7, padding=1)

    # conv_max_* -> GELU -> conv3_* on tiny post-pool maps: plain XLA (fused).
    v0 = conv2d_xla(gelu_exact(conv2d_xla(c1_0, p["conv_max_0_w"], p["conv_max_0_b"])),
                    p["conv3_0_w"], p["conv3_0_b"])
    v1 = conv2d_xla(gelu_exact(conv2d_xla(c1_1, p["conv_max_1_w"], p["conv_max_1_b"])),
                    p["conv3_1_w"], p["conv3_1_b"])
    v2 = conv2d_xla(gelu_exact(conv2d_xla(c1_2 + c1_3, p["conv_max_2_w"], p["conv_max_2_b"])),
                    p["conv3_2_w"], p["conv3_2_b"])

    c3sum = (bilinear_resize(v0, H, W)
             + bilinear_resize(v1, H, W)
             + bilinear_resize(v2, H, W)).reshape(B, f, HW)

    # Fold conv_f into conv4 (host-side, tiny f x f / C x f matrices):
    #   c4 = w4 @ (wf @ c1 + bf + c3sum) + b4 = (w4@wf) @ c1 + w4 @ c3sum + (w4@bf + b4)
    wf = p["conv_f_w"].reshape(f, f)
    w4 = p["conv4_w"].reshape(C, f)
    w2 = w4 @ wf
    b_comb = w4 @ p["conv_f_b"] + p["conv4_b"]

    # Fused full-res hot path: folded conv -> sigmoid -> x * gate (one kernel).
    out = pallas_gate_cf(c3sum, c1_flat, x_flat, w2, w4, b_comb, compute_dtype)
    return out.reshape(B, C, H, W)


# ---------------------------------------------------------------------------
# Deterministic parameter init
# ---------------------------------------------------------------------------

def init_params(key, num_feat=16):
    f = num_feat // 4
    layers = [
        ("conv1", f, num_feat, 1), ("conv_f", f, f, 1),
        ("conv2_0", f, f, 3), ("conv2_1", f, f, 3), ("conv2_2", f, f, 3), ("conv2_3", f, f, 3),
        ("conv_max_0", f, f, 3), ("conv_max_1", f, f, 3), ("conv_max_2", f, f, 3),
        ("conv3_0", f, f, 3), ("conv3_1", f, f, 3), ("conv3_2", f, f, 3),
        ("conv4", num_feat, f, 1),
    ]
    keys = jax.random.split(key, len(layers))
    params = {}
    for k, (name, cout, cin, ks) in zip(keys, layers):
        kw, kb = jax.random.split(k)
        fan_in = cin * ks * ks
        params[f"{name}_w"] = jax.random.normal(kw, (cout, cin, ks, ks), jnp.float32) / math.sqrt(fan_in)
        params[f"{name}_b"] = jax.random.normal(kb, (cout,), jnp.float32) * 0.05
    return params


if __name__ == "__main__":
    key = jax.random.PRNGKey(0)
    k_x, k_p = jax.random.split(key)

    num_feat = 16                      # f = 4
    B, H, W = 2, 48, 48                # spatial must survive stride-2 conv + stride-3 pools
    x = jax.random.normal(k_x, (B, num_feat, H, W), jnp.float32)
    params = init_params(k_p, num_feat=num_feat)

    # Donating x lets the gate kernel's input_output_aliases reuse its HBM buffer.
    esa = jax.jit(esa_forward, donate_argnums=(0,))
    out = esa(x, params)
    out = jax.block_until_ready(out)
    assert out.shape == (B, num_feat, H, W)
    assert bool(jnp.all(jnp.isfinite(out)))
    print("KERNEL_OK")
</pallas_src>

<mosaic_0001>
module attributes {stable_mosaic.version = 11 : i64} {
  func.func @_mm_bias_kernel(%arg0: i32, %arg1: i32, %arg2: memref<1x16x2304xf32, #tpu.memory_space<vmem>>, %arg3: memref<4x16xf32, #tpu.memory_space<vmem>>, %arg4: memref<4x1xf32, #tpu.memory_space<vmem>>, %arg5: memref<1x4x2304xf32, #tpu.memory_space<vmem>>) attributes {dimension_semantics = [#tpu.dimension_semantics<parallel>, #tpu.dimension_semantics<parallel>], iteration_bounds = array<i64: 2, 1>, scalar_prefetch = 0 : i64, scratch_operands = 0 : i64, tpu.core_type = #tpu.core_type<tc>, window_params = [{transform_indices = @transform_0, window_bounds = array<i64: 1, 16, 2304>}, {pipeline_mode = #tpu.pipeline_mode<synchronous>, transform_indices = @transform_1, window_bounds = array<i64: 4, 16>}, {pipeline_mode = #tpu.pipeline_mode<synchronous>, transform_indices = @transform_2, window_bounds = array<i64: 4, 1>}, {transform_indices = @transform_3, window_bounds = array<i64: 1, 4, 2304>}]} {
    %c0 = arith.constant 0 : index
    %c0_0 = arith.constant 0 : index
    %0 = vector.load %arg3[%c0, %c0_0] : memref<4x16xf32, #tpu.memory_space<vmem>>, vector<4x16xf32>
    %c0_1 = arith.constant 0 : index
    %c0_2 = arith.constant 0 : index
    %c0_3 = arith.constant 0 : index
    %1 = vector.load %arg2[%c0_1, %c0_2, %c0_3] : memref<1x16x2304xf32, #tpu.memory_space<vmem>>, vector<1x16x2304xf32>
    %2 = vector.shape_cast %1 : vector<1x16x2304xf32> to vector<16x2304xf32>
    %cst = arith.constant dense<0.000000e+00> : vector<4x2304xf32>
    %3 = tpu.matmul %0, %2, %cst {dimension_numbers = #tpu.dot_dimension_numbers<[1], [0], [0], [1], [0, 0, 1, 1], [], []>} : vector<4x16xf32>, vector<16x2304xf32>, vector<4x2304xf32> -> vector<4x2304xf32>
    %c0_4 = arith.constant 0 : index
    %c0_5 = arith.constant 0 : index
    %4 = vector.load %arg4[%c0_4, %c0_5] : memref<4x1xf32, #tpu.memory_space<vmem>>, vector<4x1xf32>
    %5 = vector.broadcast %4 : vector<4x1xf32> to vector<4x2304xf32>
    %6 = arith.addf %3, %5 : vector<4x2304xf32>
    %c0_6 = arith.constant 0 : index
    %c0_7 = arith.constant 0 : index
    %c0_8 = arith.constant 0 : index
    %7 = vector.load %arg5[%c0_6, %c0_7, %c0_8] : memref<1x4x2304xf32, #tpu.memory_space<vmem>>, vector<1x4x2304xf32>
    %8 = vector.shape_cast %7 : vector<1x4x2304xf32> to vector<4x2304xf32>
    %9 = vector.shape_cast %6 : vector<4x2304xf32> to vector<1x4x2304xf32>
    tpu.vector_store %arg5[%c0_6, %c0_7, %c0_8], %9 {strides = array<i32>} : memref<1x4x2304xf32, #tpu.memory_space<vmem>>, vector<1x4x2304xf32>,
    return
  }
  func.func @transform_0(%arg0: i32, %arg1: i32) -> (i32, i32, i32) {
    %c0_i32 = arith.constant 0 : i32
    %c0_i32_0 = arith.constant 0 : i32
    return %arg0, %c0_i32, %arg1 : i32, i32, i32
  }
  func.func @transform_1(%arg0: i32, %arg1: i32) -> (i32, i32) {
    %c0_i32 = arith.constant 0 : i32
    %c0_i32_0 = arith.constant 0 : i32
    %c0_i32_1 = arith.constant 0 : i32
    return %c0_i32, %c0_i32_0 : i32, i32
  }
  func.func @transform_2(%arg0: i32, %arg1: i32) -> (i32, i32) {
    %c0_i32 = arith.constant 0 : i32
    %c0_i32_0 = arith.constant 0 : i32
    %c0_i32_1 = arith.constant 0 : i32
    return %c0_i32, %c0_i32_0 : i32, i32
  }
  func.func @transform_3(%arg0: i32, %arg1: i32) -> (i32, i32, i32) {
    %c0_i32 = arith.constant 0 : i32
    %c0_i32_0 = arith.constant 0 : i32
    return %arg0, %c0_i32, %arg1 : i32, i32, i32
  }
}

module attributes {stable_mosaic.version = 11 : i64} {
  func.func @_mm_bias_kernel(%arg0: i32, %arg1: i32, %arg2: memref<1x36x576xf32, #tpu.memory_space<vmem>>, %arg3: memref<16x36xf32, #tpu.memory_space<vmem>>, %arg4: memref<16x1xf32, #tpu.memory_space<vmem>>, %arg5: memref<1x16x576xf32, #tpu.memory_space<vmem>>) attributes {dimension_semantics = [#tpu.dimension_semantics<parallel>, #tpu.dimension_semantics<parallel>], iteration_bounds = array<i64: 2, 1>, scalar_prefetch = 0 : i64, scratch_operands = 0 : i64, tpu.core_type = #tpu.core_type<tc>, window_params = [{transform_indices = @transform_0, window_bounds = array<i64: 1, 36, 576>}, {pipeline_mode = #tpu.pipeline_mode<synchronous>, transform_indices = @transform_1, window_bounds = array<i64: 16, 36>}, {pipeline_mode = #tpu.pipeline_mode<synchronous>, transform_indices = @transform_2, window_bounds = array<i64: 16, 1>}, {transform_indices = @transform_3, window_bounds = array<i64: 1, 16, 576>}]} {
    %c0 = arith.constant 0 : index
    %c0_0 = arith.constant 0 : index
    %0 = vector.load %arg3[%c0, %c0_0] : memref<16x36xf32, #tpu.memory_space<vmem>>, vector<16x36xf32>
    %c0_1 = arith.constant 0 : index
    %c0_2 = arith.constant 0 : index
    %c0_3 = arith.constant 0 : index
    %1 = vector.load %arg2[%c0_1, %c0_2, %c0_3] : memref<1x36x576xf32, #tpu.memory_space<vmem>>, vector<1x36x576xf32>
    %2 = vector.shape_cast %1 : vector<1x36x576xf32> to vector<36x576xf32>
    %cst = arith.constant dense<0.000000e+00> : vector<16x576xf32>
    %3 = tpu.matmul %0, %2, %cst {dimension_numbers = #tpu.dot_dimension_numbers<[1], [0], [0], [1], [0, 0, 1, 1], [], []>} : vector<16x36xf32>, vector<36x576xf32>, vector<16x576xf32> -> vector<16x576xf32>
    %c0_4 = arith.constant 0 : index
    %c0_5 = arith.constant 0 : index
    %4 = vector.load %arg4[%c0_4, %c0_5] : memref<16x1xf32, #tpu.memory_space<vmem>>, vector<16x1xf32>
    %5 = vector.broadcast %4 : vector<16x1xf32> to vector<16x576xf32>
    %6 = arith.addf %3, %5 : vector<16x576xf32>
    %c0_6 = arith.constant 0 : index
    %c0_7 = arith.constant 0 : index
    %c0_8 = arith.constant 0 : index
    %7 = vector.load %arg5[%c0_6, %c0_7, %c0_8] : memref<1x16x576xf32, #tpu.memory_space<vmem>>, vector<1x16x576xf32>
    %8 = vector.shape_cast %7 : vector<1x16x576xf32> to vector<16x576xf32>
    %9 = vector.shape_cast %6 : vector<16x576xf32> to vector<1x16x576xf32>
    tpu.vector_store %arg5[%c0_6, %c0_7, %c0_8], %9 {strides = array<i32>} : memref<1x16x576xf32, #tpu.memory_space<vmem>>, vector<1x16x576xf32>,
    return
  }
  func.func @transform_0(%arg0: i32, %arg1: i32) -> (i32, i32, i32) {
    %c0_i32 = arith.constant 0 : i32
    %c0_i32_0 = arith.constant 0 : i32
    return %arg0, %c0_i32, %arg1 : i32, i32, i32
  }
  func.func @transform_1(%arg0: i32, %arg1: i32) -> (i32, i32) {
    %c0_i32 = arith.constant 0 : i32
    %c0_i32_0 = arith.constant 0 : i32
    %c0_i32_1 = arith.constant 0 : i32
    return %c0_i32, %c0_i32_0 : i32, i32
  }
  func.func @transform_2(%arg0: i32, %arg1: i32) -> (i32, i32) {
    %c0_i32 = arith.constant 0 : i32
    %c0_i32_0 = arith.constant 0 : i32
    %c0_i32_1 = arith.constant 0 : i32
    return %c0_i32, %c0_i32_0 : i32, i32
  }
  func.func @transform_3(%arg0: i32, %arg1: i32) -> (i32, i32, i32) {
    %c0_i32 = arith.constant 0 : i32
    %c0_i32_0 = arith.constant 0 : i32
    return %arg0, %c0_i32, %arg1 : i32, i32, i32
  }
}

module attributes {stable_mosaic.version = 11 : i64} {
  func.func @_gate_kernel(%arg0: i32, %arg1: i32, %arg2: memref<1x4x2304xf32, #tpu.memory_space<vmem>>, %arg3: memref<1x4x2304xf32, #tpu.memory_space<vmem>>, %arg4: memref<1x16x2304xf32, #tpu.memory_space<vmem>>, %arg5: memref<16x4xf32, #tpu.memory_space<vmem>>, %arg6: memref<16x4xf32, #tpu.memory_space<vmem>>, %arg7: memref<16x1xf32, #tpu.memory_space<vmem>>, %arg8: memref<1x16x2304xf32, #tpu.memory_space<vmem>>) attributes {dimension_semantics = [#tpu.dimension_semantics<parallel>, #tpu.dimension_semantics<parallel>], iteration_bounds = array<i64: 2, 1>, scalar_prefetch = 0 : i64, scratch_operands = 0 : i64, tpu.core_type = #tpu.core_type<tc>, window_params = [{transform_indices = @transform_0, window_bounds = array<i64: 1, 4, 2304>}, {transform_indices = @transform_1, window_bounds = array<i64: 1, 4, 2304>}, {transform_indices = @transform_2, window_bounds = array<i64: 1, 16, 2304>}, {pipeline_mode = #tpu.pipeline_mode<synchronous>, transform_indices = @transform_3, window_bounds = array<i64: 16, 4>}, {pipeline_mode = #tpu.pipeline_mode<synchronous>, transform_indices = @transform_4, window_bounds = array<i64: 16, 4>}, {pipeline_mode = #tpu.pipeline_mode<synchronous>, transform_indices = @transform_5, window_bounds = array<i64: 16, 1>}, {transform_indices = @transform_6, window_bounds = array<i64: 1, 16, 2304>}]} {
    %c0 = arith.constant 0 : index
    %c0_0 = arith.constant 0 : index
    %0 = vector.load %arg5[%c0, %c0_0] : memref<16x4xf32, #tpu.memory_space<vmem>>, vector<16x4xf32>
    %c0_1 = arith.constant 0 : index
    %c0_2 = arith.constant 0 : index
    %c0_3 = arith.constant 0 : index
    %1 = vector.load %arg3[%c0_1, %c0_2, %c0_3] : memref<1x4x2304xf32, #tpu.memory_space<vmem>>, vector<1x4x2304xf32>
    %2 = vector.shape_cast %1 : vector<1x4x2304xf32> to vector<4x2304xf32>
    %cst = arith.constant dense<0.000000e+00> : vector<16x2304xf32>
    %3 = tpu.matmul %0, %2, %cst {dimension_numbers = #tpu.dot_dimension_numbers<[1], [0], [0], [1], [0, 0, 1, 1], [], []>} : vector<16x4xf32>, vector<4x2304xf32>, vector<16x2304xf32> -> vector<16x2304xf32>
    %c0_4 = arith.constant 0 : index
    %c0_5 = arith.constant 0 : index
    %4 = vector.load %arg6[%c0_4, %c0_5] : memref<16x4xf32, #tpu.memory_space<vmem>>, vector<16x4xf32>
    %c0_6 = arith.constant 0 : index
    %c0_7 = arith.constant 0 : index
    %c0_8 = arith.constant 0 : index
    %5 = vector.load %arg2[%c0_6, %c0_7, %c0_8] : memref<1x4x2304xf32, #tpu.memory_space<vmem>>, vector<1x4x2304xf32>
    %6 = vector.shape_cast %5 : vector<1x4x2304xf32> to vector<4x2304xf32>
    %cst_9 = arith.constant dense<0.000000e+00> : vector<16x2304xf32>
    %7 = tpu.matmul %4, %6, %cst_9 {dimension_numbers = #tpu.dot_dimension_numbers<[1], [0], [0], [1], [0, 0, 1, 1], [], []>} : vector<16x4xf32>, vector<4x2304xf32>, vector<16x2304xf32> -> vector<16x2304xf32>
    %8 = arith.addf %3, %7 : vector<16x2304xf32>
    %c0_10 = arith.constant 0 : index
    %c0_11 = arith.constant 0 : index
    %9 = vector.load %arg7[%c0_10, %c0_11] : memref<16x1xf32, #tpu.memory_space<vmem>>, vector<16x1xf32>
    %10 = vector.broadcast %9 : vector<16x1xf32> to vector<16x2304xf32>
    %11 = arith.addf %8, %10 : vector<16x2304xf32>
    %c0_12 = arith.constant 0 : index
    %c0_13 = arith.constant 0 : index
    %c0_14 = arith.constant 0 : index
    %12 = vector.load %arg4[%c0_12, %c0_13, %c0_14] : memref<1x16x2304xf32, #tpu.memory_space<vmem>>, vector<1x16x2304xf32>
    %13 = vector.shape_cast %12 : vector<1x16x2304xf32> to vector<16x2304xf32>
    %14 = arith.negf %11 : vector<16x2304xf32>
    %15 = math.exp %14 : vector<16x2304xf32>
    %cst_15 = arith.constant 1.000000e+00 : f32
    %16 = vector.broadcast %cst_15 : f32 to vector<16x2304xf32>
    %17 = arith.addf %16, %15 : vector<16x2304xf32>
    %18 = arith.divf %16, %17 : vector<16x2304xf32>
    %19 = arith.mulf %13, %18 : vector<16x2304xf32>
    %c0_16 = arith.constant 0 : index
    %c0_17 = arith.constant 0 : index
    %c0_18 = arith.constant 0 : index
    %20 = vector.load %arg8[%c0_16, %c0_17, %c0_18] : memref<1x16x2304xf32, #tpu.memory_space<vmem>>, vector<1x16x2304xf32>
    %21 = vector.shape_cast %20 : vector<1x16x2304xf32> to vector<16x2304xf32>
    %22 = vector.shape_cast %19 : vector<16x2304xf32> to vector<1x16x2304xf32>
    tpu.vector_store %arg8[%c0_16, %c0_17, %c0_18], %22 {strides = array<i32>} : memref<1x16x2304xf32, #tpu.memory_space<vmem>>, vector<1x16x2304xf32>,
    return
  }
  func.func @transform_0(%arg0: i32, %arg1: i32) -> (i32, i32, i32) {
    %c0_i32 = arith.constant 0 : i32
    %c0_i32_0 = arith.constant 0 : i32
    return %arg0, %c0_i32, %arg1 : i32, i32, i32
  }
  func.func @transform_1(%arg0: i32, %arg1: i32) -> (i32, i32, i32) {
    %c0_i32 = arith.constant 0 : i32
    %c0_i32_0 = arith.constant 0 : i32
    return %arg0, %c0_i32, %arg1 : i32, i32, i32
  }
  func.func @transform_2(%arg0: i32, %arg1: i32) -> (i32, i32, i32) {
    %c0_i32 = arith.constant 0 : i32
    %c0_i32_0 = arith.constant 0 : i32
    return %arg0, %c0_i32, %arg1 : i32, i32, i32
  }
  func.func @transform_3(%arg0: i32, %arg1: i32) -> (i32, i32) {
    %c0_i32 = arith.constant 0 : i32
    %c0_i32_0 = arith.constant 0 : i32
    %c0_i32_1 = arith.constant 0 : i32
    return %c0_i32, %c0_i32_0 : i32, i32
  }
  func.func @transform_4(%arg0: i32, %arg1: i32) -> (i32, i32) {
    %c0_i32 = arith.constant 0 : i32
    %c0_i32_0 = arith.constant 0 : i32
    %c0_i32_1 = arith.constant 0 : i32
    return %c0_i32, %c0_i32_0 : i32, i32
  }
  func.func @transform_5(%arg0: i32, %arg1: i32) -> (i32, i32) {
    %c0_i32 = arith.constant 0 : i32
    %c0_i32_0 = arith.constant 0 : i32
    %c0_i32_1 = arith.constant 0 : i32
    return %c0_i32, %c0_i32_0 : i32, i32
  }
  func.func @transform_6(%arg0: i32, %arg1: i32) -> (i32, i32, i32) {
    %c0_i32 = arith.constant 0 : i32
    %c0_i32_0 = arith.constant 0 : i32
    return %arg0, %c0_i32, %arg1 : i32, i32, i32
  }
}

</mosaic_0001>

<bundles_post_ra>
// kernel: esa_forward.3
= control target key start
LH: loop header
LB: loop body
LE: loop exit
PB: predicated region body
PF: predicated region fallthrough
CT: control target
= control target key end

     0   :  { %8 = vsyncpa [#allocation3], 0  ;;  %s934_s12 = smov 0   ;;  %s936_s13 = smov 0   ;;  %s1094_s0 = inlined_call_operand.vmem [shape: f32[2,16,2304], index: 0, kind: input, shape index: {}]   ;;  %s1095_s1 = inlined_call_operand.hbm [shape: f32[4,16], index: 1, kind: input, shape index: {}]   ;;  %s1096_s2 = inlined_call_operand.vmem [shape: f32[4,1], index: 2, kind: input, shape index: {}]   ;;  %s1097_s3 = inlined_call_operand.vmem [shape: f32[2,4,2304], index: 3, kind: output, shape index: {}]  }
   0x1   :  { %s938_s14 = smov 0  }
   0x2 LB: > { %s786_s15 = sadd.s32 4294967295, %s910_s14   ;;  %s26_s16 = sadd.s32 1, %s906_s13  ;;  %s910_s14 = sphi %s938_s14, %s14_s14   ;;  %s906_s13 = sphi %s936_s13, %s1099_s13   ;;  %s902_s12 = sphi %s934_s12, %s1098_s12  }
   0x3   : > { %p28_p0 = scmp.ge.s32.totalorder %s26_s16, 2  ;;  %p788_p1 = scmp.ge.s32.totalorder %s910_s14, 1 }
   0x4   : > { %p129_p2 = scmp.lt.s32.totalorder %s910_s14, 3  ;;  %p825_p4 = scmp.eq.s32.totalorder %s786_s15, 0 }
   0x5   : > { %s1101_s16 = smov (%p28_p0, %s26_s16), 0  ;;  %s141_s19 = sshll.u32 %s1095_s1, 4  ;;  %s142_s19 = int_to_ptr.hbm [resolvable:$true] %s141_s19 }
   0x6   : > { %p130_p3 = pnand %p788_p1, %p129_p2  ;;  %s912_s20 = smov [#allocation2]  }
   0x7   : > { %s143_s21 = sshll.u32 %s912_s20, 4  ;;  %s144_s21 = int_to_ptr.vmem [resolvable:$true] %s143_s21 }
   0x8   : > { %p821_p5 = pneg %p130_p3  ;;  %172 = sbr.rel (%p130_p3) target bundleno = 189 (0xbd), region = 32 }
   0xa   : > { %p822_p6 = pnand %p825_p4, %p821_p5 }
   0xc   : > { %824 = dma.hbm_to_vmem [thread:$0]  (!%p822_p6), %s142_s19, 64, %s144_s21, [#allocation3]  }
   0xd   : > { %897 = dma.done.wait (%p825_p4), [#allocation3], 64  }
   0xe   : > { %899 = vsyncadd (%p825_p4), [#allocation3], 4294967232  ;;  %p206_p7 = scmp.lt.s32.totalorder %s902_s12, 1  ;;  %v913_v0 = vmov 0   ;;  %vm268_vm0 = vcmask 130048   ;;  %vm659_vm1 = vcmask 1043456  }
   0xf   : > { %853 = vset.pattern.permute.xlu0 %v913_v0  ;;  %v971_v8 = vld [vmem:[#allocation2] sm:$0xf] }
  0x10   : > { %s1103_s12 = smov (!%p206_p7, %s902_s12), 1  ;;  %v262_v21 = vld [vmem:[%s1096_s2] sm:$0xf] }
  0x11   : > { %s815_s22 = smul.u32 288, %s1103_s12  ;;  %265 = vperm.xlu0 %853, %v262_v21  }
  0x12   : > { %s816_s28 = smul.u32 72, %s1103_s12 }
  0x13   : > { %s962_s25 = scalar_lea.vmem %s1094_s0, %s815_s22 }
  0x14   : > { %v244_v1 = vld [vmem:[%s962_s25 + $0x90] sm:$0xff]  ;;  %v245_v2 = vld [vmem:[%s962_s25 + $0x98] sm:$0xff]  ;;  %v247_v3 = vld [vmem:[%s962_s25 + $0xa8] sm:$0xff]  ;;  %s1049_s4 = scalar_lea.vmem %s1097_s3, %s816_s28 }
  0x15   : > { %286 = vmatpush.msra.mxu0 %v244_v1  ;;  %306 = vmatpush.msra.mxu1 %v245_v2  ;;  %v226_v4 = vld [vmem:[%s962_s25] sm:$0xff]  ;;  %v227_v5 = vld [vmem:[%s962_s25 + $0x8] sm:$0xff]  ;;  %v229_v7 = vld [vmem:[%s962_s25 + $0x18] sm:$0xff] }
  0x16   : > { %v246_v6 = vld [vmem:[%s962_s25 + $0xa0] sm:$0xff]  ;;  %346 = vmatpush.msra.mxu3 %v247_v3  ;;  %v249_v9 = vld [vmem:[%s962_s25 + $0xb8] sm:$0xff]  ;;  %v228_v10 = vld [vmem:[%s962_s25 + $0x10] sm:$0xff] }
  0x17   : > { %326 = vmatpush.msra.mxu2 %v246_v6  ;;  %287 = vmatpush.msra.mxu0 %v226_v4  ;;  %v248_v11 = vld [vmem:[%s962_s25 + $0xb0] sm:$0xff]  ;;  %v251_v12 = vld [vmem:[%s962_s25 + $0xc8] sm:$0xff]  ;;  %v250_v14 = vld [vmem:[%s962_s25 + $0xc0] sm:$0xff] }
  0x18   : > { %307 = vmatpush.msra.mxu1 %v227_v5  ;;  %347 = vmatpush.msra.mxu3 %v229_v7  ;;  %v231_v13 = vld [vmem:[%s962_s25 + $0x28] sm:$0xff]  ;;  %v230_v15 = vld [vmem:[%s962_s25 + $0x20] sm:$0xff]  ;;  %v233_v16 = vld [vmem:[%s962_s25 + $0x38] sm:$0xff] }
  0x19   : > { %795 = vmatmul.msk.f32.vlgmr.msra.gmra.mxu0 %vm268_vm0, %v971_v8  ;;  %796 = vmatmul.msk.f32.vlgmr.msra.gmra.mxu1 %vm268_vm0, %v971_v8  ;;  %v253_v17 = vld [vmem:[%s962_s25 + $0xd8] sm:$0xff]  ;;  %v232_v18 = vld [vmem:[%s962_s25 + $0x30] sm:$0xff]  ;;  %v255_v20 = vld [vmem:[%s962_s25 + $0xe8] sm:$0xff] }
  0x1a   : > { %798 = vmatmul.msk.f32.vlgmr.msra.gmra.mxu3 %vm268_vm0, %v971_v8  ;;  %386 = vmatpush.msrb.mxu1 %v249_v9  ;;  %v252_v19 = vld [vmem:[%s962_s25 + $0xd0] sm:$0xff]  ;;  %v235_v22 = vld [vmem:[%s962_s25 + $0x48] sm:$0xff]  ;;  %v234_v23 = vld [vmem:[%s962_s25 + $0x40] sm:$0xff] }
  0x1b   : > { %327 = vmatpush.msra.mxu2 %v228_v10  ;;  %366 = vmatpush.msrb.mxu0 %v248_v11  ;;  %v254_v24 = vld [vmem:[%s962_s25 + $0xe0] sm:$0xff]  ;;  %v237_v25 = vld [vmem:[%s962_s25 + $0x58] sm:$0xff]  ;;  %v256_v27 = vld [vmem:[%s962_s25 + $0xf0] sm:$0xff] }
  0x1c   : > { %797 = vmatmul.msk.f32.vlgmr.msra.gmra.mxu2 %vm268_vm0, %v971_v8  ;;  %426 = vmatpush.msrb.mxu3 %v251_v12  ;;  %v257_v26 = vld [vmem:[%s962_s25 + $0xf8] sm:$0xff]  ;;  %v236_v28 = vld [vmem:[%s962_s25 + $0x50] sm:$0xff]  ;;  %v259_v29 = vld [vmem:[%s962_s25 + $0x108] sm:$0xff] }
  0x1d   : > { %387 = vmatpush.msrb.mxu1 %v231_v13  ;;  %406 = vmatpush.msrb.mxu2 %v250_v14  ;;  %v239_v30 = vld [vmem:[%s962_s25 + $0x68] sm:$0xff]  ;;  %v258_v31 = vld [vmem:[%s962_s25 + $0x100] sm:$0xff]  ;;  %v241_v32 = vld [vmem:[%s962_s25 + $0x78] sm:$0xff] }
  0x1e   : > { %367 = vmatpush.msrb.mxu0 %v230_v15  ;;  %427 = vmatpush.msrb.mxu3 %v233_v16  ;;  %v238_v33 = vld [vmem:[%s962_s25 + $0x60] sm:$0xff]  ;;  %v240_v34 = vld [vmem:[%s962_s25 + $0x70] sm:$0xff]  ;;  %v261_v35 = vld [vmem:[%s962_s25 + $0x118] sm:$0xff] }
  0x1f   : > { %466 = vmatpush.msra.mxu1 %v253_v17  ;;  %407 = vmatpush.msrb.mxu2 %v232_v18  ;;  %v260_v36 = vld [vmem:[%s962_s25 + $0x110] sm:$0xff]  ;;  %v243_v37 = vld [vmem:[%s962_s25 + $0x88] sm:$0xff]  ;;  %v242_v38 = vld [vmem:[%s962_s25 + $0x80] sm:$0xff] }
  0x20   : > { %446 = vmatpush.msra.mxu0 %v252_v19  ;;  %506 = vmatpush.msra.mxu3 %v255_v20 }
  0x21   : > { %799 = vmatmul.msk.f32.vlgmr.msrb.gmra.mxu0 %vm268_vm0, %v971_v8  ;;  %800 = vmatmul.msk.f32.vlgmr.msrb.gmra.mxu1 %vm268_vm0, %v971_v8 }
  0x22   : > { %802 = vmatmul.msk.f32.vlgmr.msrb.gmra.mxu3 %vm268_vm0, %v971_v8  ;;  %467 = vmatpush.msra.mxu1 %v235_v22 }
  0x23   : > { %447 = vmatpush.msra.mxu0 %v234_v23  ;;  %486 = vmatpush.msra.mxu2 %v254_v24 }
  0x24   : > { %801 = vmatmul.msk.f32.vlgmr.msrb.gmra.mxu2 %vm268_vm0, %v971_v8  ;;  %507 = vmatpush.msra.mxu3 %v237_v25 }
  0x25   : > { %546 = vmatpush.msrb.mxu1 %v257_v26  ;;  %526 = vmatpush.msrb.mxu0 %v256_v27 }
  0x26   : > { %487 = vmatpush.msra.mxu2 %v236_v28  ;;  %586 = vmatpush.msrb.mxu3 %v259_v29 }
  0x27   : > { %547 = vmatpush.msrb.mxu1 %v239_v30  ;;  %527 = vmatpush.msrb.mxu0 %v238_v33 }
  0x28   : > { %566 = vmatpush.msrb.mxu2 %v258_v31  ;;  %587 = vmatpush.msrb.mxu3 %v241_v32 }
  0x29   : > { %803 = vmatmul.msk.f32.vlgmr.msra.gmra.mxu0 %vm268_vm0, %v971_v8  ;;  %804 = vmatmul.msk.f32.vlgmr.msra.gmra.mxu1 %vm268_vm0, %v971_v8 }
  0x2a   : > { %806 = vmatmul.msk.f32.vlgmr.msra.gmra.mxu3 %vm268_vm0, %v971_v8  ;;  %567 = vmatpush.msrb.mxu2 %v240_v34 }
  0x2b   : > { %626 = vmatpush.msra.mxu1 %v261_v35  ;;  %606 = vmatpush.msra.mxu0 %v260_v36 }
  0x2c   : > { %805 = vmatmul.msk.f32.vlgmr.msra.gmra.mxu2 %vm268_vm0, %v971_v8 }
  0x2d   : > { %627 = vmatpush.msra.mxu1 %v243_v37  ;;  %607 = vmatpush.msra.mxu0 %v242_v38 }
  0x31   : > { %807 = vmatmul.msk.f32.vlgmr.msrb.gmra.mxu0 %vm268_vm0, %v971_v8  ;;  %808 = vmatmul.msk.f32.vlgmr.msrb.gmra.mxu1 %vm268_vm0, %v971_v8 }
  0x32   : > { %810 = vmatmul.msk.f32.vlgmr.msrb.gmra.mxu3 %vm268_vm0, %v971_v8 }
  0x34   : > { %809 = vmatmul.msk.f32.vlgmr.msrb.gmra.mxu2 %vm268_vm0, %v971_v8 }
  0x39   : > { %811 = vmatmul.msk.f32.vlgmr.msra.gmra.mxu0 %vm268_vm0, %v971_v8  ;;  %812 = vmatmul.msk.f32.vlgmr.msra.gmra.mxu1 %vm268_vm0, %v971_v8 }
  0x83   : > { %v1041_v39 = vpop.permute.xlu0 %265 }
  0x96   : > { %v289_v40 = vpop.f32.mrf.mxu0  ;;  %v309_v41 = vpop.f32.mrf.mxu1 }
  0x97   : > { %v290_v42 = vadd.f32 %v289_v40, %v1041_v39  ;;  %v310_v43 = vadd.f32 %v309_v41, %v1041_v39 }
  0x99   : > { %v650_v44 = vrot.slane %v310_v43, 4 }
  0x9b   : > { %v660_v45 = vsel %vm659_vm1, %v290_v42, %v650_v44 }
  0x9c   : > { %678 = vst [vmem:[%s1049_s4] sm:$0xff] %v660_v45 }
  0x9d   : > { %v349_v46 = vpop.f32.mrf.mxu3 }
  0x9e   : > { %v350_v47 = vadd.f32 %v349_v46, %v1041_v39  ;;  %v369_v48 = vpop.f32.mrf.mxu0  ;;  %v389_v50 = vpop.f32.mrf.mxu1 }
  0x9f   : > { %v329_v49 = vpop.f32.mrf.mxu2  ;;  %v370_v53 = vadd.f32 %v369_v48, %v1041_v39  ;;  %v390_v54 = vadd.f32 %v389_v50, %v1041_v39 }
  0xa0   : > { %v651_v51 = vrot.slane %v350_v47, 4  ;;  %v330_v52 = vadd.f32 %v329_v49, %v1041_v39 }
  0xa1   : > { %v652_v56 = vrot.slane %v390_v54, 4 }
  0xa2   : > { %v661_v55 = vsel %vm659_vm1, %v330_v52, %v651_v51 }
  0xa3   : > { %679 = vst [vmem:[%s1049_s4 + $0x8] sm:$0xff] %v661_v55  ;;  %v662_v57 = vsel %vm659_vm1, %v370_v53, %v652_v56 }
  0xa4   : > { %680 = vst [vmem:[%s1049_s4 + $0x10] sm:$0xff] %v662_v57 }
  0xa5   : > { %v429_v58 = vpop.f32.mrf.mxu3 }
  0xa6   : > { %v430_v59 = vadd.f32 %v429_v58, %v1041_v39  ;;  %v449_v60 = vpop.f32.mrf.mxu0  ;;  %v469_v62 = vpop.f32.mrf.mxu1 }
  0xa7   : > { %v409_v61 = vpop.f32.mrf.mxu2  ;;  %v450_v1 = vadd.f32 %v449_v60, %v1041_v39  ;;  %v470_v2 = vadd.f32 %v469_v62, %v1041_v39 }
  0xa8   : > { %v653_v63 = vrot.slane %v430_v59, 4  ;;  %v410_v0 = vadd.f32 %v409_v61, %v1041_v39 }
  0xa9   : > { %v654_v4 = vrot.slane %v470_v2, 4 }
  0xaa   : > { %v663_v3 = vsel %vm659_vm1, %v410_v0, %v653_v63 }
  0xab   : > { %681 = vst [vmem:[%s1049_s4 + $0x18] sm:$0xff] %v663_v3  ;;  %v664_v5 = vsel %vm659_vm1, %v450_v1, %v654_v4 }
  0xac   : > { %682 = vst [vmem:[%s1049_s4 + $0x20] sm:$0xff] %v664_v5 }
  0xad   : > { %v509_v6 = vpop.f32.mrf.mxu3 }
  0xae   : > { %v510_v7 = vadd.f32 %v509_v6, %v1041_v39  ;;  %v529_v8 = vpop.f32.mrf.mxu0  ;;  %v549_v10 = vpop.f32.mrf.mxu1 }
  0xaf   : > { %v489_v9 = vpop.f32.mrf.mxu2  ;;  %v530_v13 = vadd.f32 %v529_v8, %v1041_v39  ;;  %v550_v14 = vadd.f32 %v549_v10, %v1041_v39 }
  0xb0   : > { %v655_v11 = vrot.slane %v510_v7, 4  ;;  %v490_v12 = vadd.f32 %v489_v9, %v1041_v39 }
  0xb1   : > { %v656_v16 = vrot.slane %v550_v14, 4 }
  0xb2   : > { %v665_v15 = vsel %vm659_vm1, %v490_v12, %v655_v11 }
  0xb3   : > { %683 = vst [vmem:[%s1049_s4 + $0x28] sm:$0xff] %v665_v15  ;;  %v666_v17 = vsel %vm659_vm1, %v530_v13, %v656_v16 }
  0xb4   : > { %684 = vst [vmem:[%s1049_s4 + $0x30] sm:$0xff] %v666_v17 }
  0xb5   : > { %v589_v18 = vpop.f32.mrf.mxu3 }
  0xb6   : > { %v590_v19 = vadd.f32 %v589_v18, %v1041_v39  ;;  %v609_v20 = vpop.f32.mrf.mxu0  ;;  %v629_v22 = vpop.f32.mrf.mxu1 }
  0xb7   : > { %v569_v21 = vpop.f32.mrf.mxu2  ;;  %v630_v25 = vadd.f32 %v629_v22, %v1041_v39  ;;  %v610_v27 = vadd.f32 %v609_v20, %v1041_v39 }
  0xb8   : > { %v657_v23 = vrot.slane %v590_v19, 4  ;;  %v570_v24 = vadd.f32 %v569_v21, %v1041_v39 }
  0xb9   : > { %v658_v28 = vrot.slane %v630_v25, 4 }
  0xba   : > { %v667_v26 = vsel %vm659_vm1, %v570_v24, %v657_v23 }
  0xbb   : > { %685 = vst [vmem:[%s1049_s4 + $0x38] sm:$0xff] %v667_v26  ;;  %v668_v29 = vsel %vm659_vm1, %v610_v27, %v658_v28 }
  0xbc   : > { %686 = vst [vmem:[%s1049_s4 + $0x40] sm:$0xff] %v668_v29 }
  0xbd PF: > { %s14_s14 = sadd.s32 1, %s910_s14   ;;  %s1098_s12 = smov %s906_s13 }
  0xbe   : > { %p11_p8 = scmp.ge.s32.totalorder %s14_s14, 4   ;;  %s1099_s13 = smov %s1101_s16 }
  0xc0   :  { %13 = sbr.rel (!%p11_p8) target bundleno = 2 (0x2), region = 67 }
  0xc5   :  { %717 = vsyncpa [#allocation3], 1 }
  0xc6   :  { %719 = vsyncpa [#allocation3 + $0x1], 1 }

// kernel: esa_forward.4
= control target key start
LH: loop header
LB: loop body
LE: loop exit
PB: predicated region body
PF: predicated region fallthrough
CT: control target
= control target key end

     0   :  { %s587_s12 = smov 0   ;;  %s589_s13 = smov 0   ;;  %s691_s0 = inlined_call_operand.vmem [shape: f32[2,36,576], index: 0, kind: input, shape index: {}]   ;;  %s692_s1 = inlined_call_operand.vmem [shape: f32[16,36], index: 1, kind: input, shape index: {}]   ;;  %s693_s2 = inlined_call_operand.vmem [shape: f32[16,1], index: 2, kind: input, shape index: {}]   ;;  %s694_s3 = inlined_call_operand.vmem [shape: f32[2,16,576], index: 3, kind: output, shape index: {}]  }
   0x1   :  { %s591_s14 = smov 0  }
   0x2 LB: > { %s25_s15 = sadd.s32 1, %s560_s13  ;;  %p489_p0 = scmp.ge.s32.totalorder %s564_s14, 1  ;;  %s564_s14 = sphi %s591_s14, %s13_s14   ;;  %s560_s13 = sphi %s589_s13, %s696_s13   ;;  %s556_s12 = sphi %s587_s12, %s695_s12  }
   0x3   : > { %p27_p1 = scmp.ge.s32.totalorder %s25_s15, 2  ;;  %p158_p2 = scmp.lt.s32.totalorder %s564_s14, 3 }
   0x5   : > { %s698_s15 = smov (%p27_p1, %s25_s15), 0  ;;  %p159_p3 = pnand %p489_p0, %p158_p2 }
   0x6   : > { %p191_p4 = scmp.lt.s32.totalorder (!%p159_p3), %s556_s12, 1 }
   0x7   : > { %162 = sbr.rel (%p159_p3) target bundleno = 174 (0xae), region = 32 }
   0xc   : > { %v566_v0 = vmov 0   ;;  %v237_v1 = vld [vmem:[%s693_s2] sm:$0xff]  ;;  %s700_s12 = smov (!%p191_p4, %s556_s12), 1  ;;  %vm256_vm0 = vcmask 1043456   ;;  %vm249_vm1 = vcmask 293888   ;;  %v238_v24 = vld [vmem:[%s693_s2 + $0x8] sm:$0xff] }
   0xd   : > { %541 = vset.pattern.permute.xlu0 %v566_v0  ;;  %s514_s18 = smul.u32 200, %s700_s12  ;;  %v210_v22 = vld [vmem:[%s692_s1] sm:$0xff]  ;;  %v211_v27 = vld [vmem:[%s692_s1 + $0x8] sm:$0xff]  ;;  %vm391_vm2 = vcmask 523264  }
   0xe   : > { %241 = vperm.xlu0 %541, %v237_v1   ;;  %s515_s28 = smul.u32 80, %s700_s12 }
   0xf   : > { %s614_s21 = scalar_lea.vmem %s691_s0, %s514_s18 }
  0x10   : > { %v232_v2 = vld [vmem:[%s614_s21 + $0xa0] sm:$0xf]  ;;  %v233_v3 = vld [vmem:[%s614_s21 + $0xa8] sm:$0xf]  ;;  %v234_v4 = vld [vmem:[%s614_s21 + $0xb0] sm:$0xf]  ;;  %s670_s4 = scalar_lea.vmem %s694_s3, %s515_s28 }
  0x11   : > { %492 = vmatpush.msk.msra.mxu0 %vm256_vm0, %v232_v2  ;;  %495 = vmatpush.msk.msra.mxu1 %vm256_vm0, %v233_v3  ;;  %v235_v5 = vld [vmem:[%s614_s21 + $0xb8] sm:$0xf]  ;;  %v228_v7 = vld [vmem:[%s614_s21 + $0x80] sm:$0xff]  ;;  %v229_v8 = vld [vmem:[%s614_s21 + $0x88] sm:$0xff] }
  0x12   : > { %v227_v6 = vld [vmem:[%s614_s21 + $0x78] sm:$0xff]  ;;  %498 = vmatpush.msk.msra.mxu2 %vm256_vm0, %v234_v4  ;;  %501 = vmatpush.msk.msra.mxu3 %vm256_vm0, %v235_v5  ;;  %v230_v9 = vld [vmem:[%s614_s21 + $0x90] sm:$0xff]  ;;  %v224_v12 = vld [vmem:[%s614_s21 + $0x60] sm:$0xff] }
  0x13   : > { %v222_v10 = vld [vmem:[%s614_s21 + $0x50] sm:$0xff]  ;;  %284 = vmatpush.msra.mxu0 %v227_v6  ;;  %307 = vmatpush.msra.mxu1 %v228_v7  ;;  %v223_v11 = vld [vmem:[%s614_s21 + $0x58] sm:$0xff]  ;;  %v225_v13 = vld [vmem:[%s614_s21 + $0x68] sm:$0xff] }
  0x14   : > { %330 = vmatpush.msra.mxu2 %v229_v8  ;;  %353 = vmatpush.msra.mxu3 %v230_v9  ;;  %v217_v14 = vld [vmem:[%s614_s21 + $0x28] sm:$0xff]  ;;  %v218_v15 = vld [vmem:[%s614_s21 + $0x30] sm:$0xff]  ;;  %v219_v16 = vld [vmem:[%s614_s21 + $0x38] sm:$0xff] }
  0x15   : > { %285 = vmatpush.msra.mxu0 %v222_v10  ;;  %308 = vmatpush.msra.mxu1 %v223_v11  ;;  %v220_v17 = vld [vmem:[%s614_s21 + $0x40] sm:$0xff]  ;;  %v213_v19 = vld [vmem:[%s614_s21 + $0x8] sm:$0xff]  ;;  %v214_v20 = vld [vmem:[%s614_s21 + $0x10] sm:$0xff] }
  0x16   : > { %331 = vmatpush.msra.mxu2 %v224_v12  ;;  %354 = vmatpush.msra.mxu3 %v225_v13  ;;  %v212_v18 = vld [vmem:[%s614_s21] sm:$0xff]  ;;  %v215_v21 = vld [vmem:[%s614_s21 + $0x18] sm:$0xff]  ;;  %v226_v26 = vld [vmem:[%s614_s21 + $0x70] sm:$0xff] }
  0x17   : > { %286 = vmatpush.msra.mxu0 %v217_v14  ;;  %309 = vmatpush.msra.mxu1 %v218_v15  ;;  %v236_v23 = vld [vmem:[%s614_s21 + $0xc0] sm:$0xf]  ;;  %v231_v25 = vld [vmem:[%s614_s21 + $0x98] sm:$0xff]  ;;  %v221_v28 = vld [vmem:[%s614_s21 + $0x48] sm:$0xff] }
  0x18   : > { %332 = vmatpush.msra.mxu2 %v219_v16  ;;  %355 = vmatpush.msra.mxu3 %v220_v17  ;;  %v216_v29 = vld [vmem:[%s614_s21 + $0x20] sm:$0xff] }
  0x19   : > { %287 = vmatpush.msra.mxu0 %v212_v18  ;;  %310 = vmatpush.msra.mxu1 %v213_v19 }
  0x1a   : > { %333 = vmatpush.msra.mxu2 %v214_v20  ;;  %356 = vmatpush.msra.mxu3 %v215_v21 }
  0x1b   : > { %493 = vmatmul.msk.f32.vlgmr.msra.gmra.mxu0 %vm249_vm1, %v210_v22  ;;  %496 = vmatmul.msk.f32.vlgmr.msra.gmra.mxu1 %vm249_vm1, %v210_v22 }
  0x1c   : > { %499 = vmatmul.msk.f32.vlgmr.msra.gmra.mxu2 %vm249_vm1, %v210_v22  ;;  %502 = vmatmul.msk.f32.vlgmr.msra.gmra.mxu3 %vm249_vm1, %v210_v22 }
  0x1d   : > { %504 = vmatpush.msk.msrb.mxu0 %vm256_vm0, %v236_v23  ;;  %509 = vmatpush.msk.msrb.mxu1 %vm256_vm0, %v236_v23 }
  0x1e   : > { %246 = vperm.xlu0 %541, %v238_v24  }
  0x1f   : > { %376 = vmatpush.msrb.mxu0 %v231_v25  ;;  %510 = vmatpush.msrb.mxu1 %v231_v25 }
  0x21   : > { %377 = vmatpush.msrb.mxu0 %v226_v26  ;;  %511 = vmatpush.msrb.mxu1 %v226_v26 }
  0x23   : > { %494 = vmatmul.msk.f32.gmra.mxu0 %vm249_vm1, %v211_v27  ;;  %497 = vmatmul.msk.f32.gmra.mxu1 %vm249_vm1, %v211_v27 }
  0x24   : > { %500 = vmatmul.msk.f32.gmra.mxu2 %vm249_vm1, %v211_v27  ;;  %503 = vmatmul.msk.f32.gmra.mxu3 %vm249_vm1, %v211_v27 }
  0x25   : > { %378 = vmatpush.msrb.mxu0 %v221_v28  ;;  %512 = vmatpush.msrb.mxu1 %v221_v28 }
  0x27   : > { %379 = vmatpush.msrb.mxu0 %v216_v29  ;;  %513 = vmatpush.msrb.mxu1 %v216_v29 }
  0x2b   : > { %505 = vmatmul.msk.f32.vlgmr.msrb.gmra.mxu0 %vm249_vm1, %v210_v22  ;;  %506 = vmatmul.msk.f32.vlgmr.msrb.gmra.mxu1 %vm249_vm1, %v211_v27 }
  0x80   : > { %v242_v30 = vpop.permute.xlu0 %241 }
  0x90   : > { %v247_v35 = vpop.permute.xlu0 %246 }
  0x98   : > { %v289_v31 = vpop.f32.mrf.mxu0  ;;  %v312_v32 = vpop.f32.mrf.mxu1 }
  0x99   : > { %v290_v33 = vadd.f32 %v289_v31, %v242_v30  ;;  %v313_v34 = vadd.f32 %v312_v32, %v242_v30 }
  0x9b   : > { %387 = vst [vmem:[%s670_s4] sm:$0xff] %v290_v33 }
  0x9c   : > { %388 = vst [vmem:[%s670_s4 + $0x8] sm:$0xff] %v313_v34 }
  0x9f   : > { %v335_v36 = vpop.f32.mrf.mxu2  ;;  %v358_v37 = vpop.f32.mrf.mxu3 }
  0xa0   : > { %v336_v38 = vadd.f32 %v335_v36, %v242_v30  ;;  %v359_v39 = vadd.f32 %v358_v37, %v242_v30  ;;  %v292_v40 = vpop.f32.mrf.mxu0  ;;  %v315_v41 = vpop.f32.mrf.mxu1 }
  0xa1   : > { %v293_v42 = vadd.f32 %v292_v40, %v247_v35  ;;  %v316_v43 = vadd.f32 %v315_v41, %v247_v35 }
  0xa2   : > { %389 = vst [vmem:[%s670_s4 + $0x10] sm:$0xff] %v336_v38 }
  0xa3   : > { %390 = vst [vmem:[%s670_s4 + $0x18] sm:$0xff] %v359_v39 }
  0xa4   : > { %393 = vst [vmem:[%s670_s4 + $0x28] sm:$0xff] %v293_v42 }
  0xa5   : > { %394 = vst [vmem:[%s670_s4 + $0x30] sm:$0xff] %v316_v43 }
  0xa7   : > { %v338_v44 = vpop.f32.mrf.mxu2  ;;  %v361_v45 = vpop.f32.mrf.mxu3 }
  0xa8   : > { %v339_v46 = vadd.f32 %v338_v44, %v247_v35  ;;  %v362_v47 = vadd.f32 %v361_v45, %v247_v35  ;;  %v381_v48 = vpop.f32.mrf.mxu0  ;;  %v384_v49 = vpop.f32.mrf.mxu1 }
  0xa9   : > { %v382_v50 = vadd.f32 %v381_v48, %v242_v30  ;;  %v385_v51 = vadd.f32 %v384_v49, %v247_v35 }
  0xaa   : > { %395 = vst [vmem:[%s670_s4 + $0x38] sm:$0xff] %v339_v46 }
  0xab   : > { %396 = vst [vmem:[%s670_s4 + $0x40] sm:$0xff] %v362_v47 }
  0xac   : > { %392 = vst.msk [vmem:[%s670_s4 + $0x20] sm:$0xff] %vm391_vm2, %v382_v50 }
  0xad   : > { %397 = vst.msk [vmem:[%s670_s4 + $0x48] sm:$0xff] %vm391_vm2, %v385_v51 }
  0xae PF: > { %s13_s14 = sadd.s32 1, %s564_s14   ;;  %s695_s12 = smov %s560_s13 }
  0xaf   : > { %p10_p5 = scmp.ge.s32.totalorder %s13_s14, 4   ;;  %s696_s13 = smov %s698_s15 }
  0xb1   :  { %12 = sbr.rel (!%p10_p5) target bundleno = 2 (0x2), region = 62 }

// kernel: esa_forward.5
= control target key start
LH: loop header
LB: loop body
LE: loop exit
PB: predicated region body
PF: predicated region fallthrough
CT: control target
= control target key end

     0   :  { %s2727_s21 = smov 0   ;;  %s2729_s22 = smov 0   ;;  %s3981_s0 = inlined_call_operand.vmem [shape: f32[2,4,2304], index: 0, kind: input, shape index: {}]   ;;  %s3982_s1 = inlined_call_operand.vmem [shape: f32[2,4,2304], index: 1, kind: input, shape index: {}]   ;;  %s3983_s2 = inlined_call_operand.vmem [shape: f32[2,16,2304], index: 2, kind: input, shape index: {}, may-alias: {2,6}]   ;;  %s3984_s3 = inlined_call_operand.vmem [shape: f32[16,4], index: 3, kind: input, shape index: {}]   ;;  %s3985_s4 = inlined_call_operand.vmem [shape: f32[16,4], index: 4, kind: input, shape index: {}]   ;;  %s3986_s5 = inlined_call_operand.vmem [shape: f32[16,1], index: 5, kind: input, shape index: {}]   ;;  %s3987_s6 = inlined_call_operand.vmem [shape: f32[2,16,2304], index: 6, kind: output, shape index: {}, may-alias: {2,6}]  }
   0x1   :  { %s2731_s23 = smov 0  }
   0x2 LB: > { %s28_s24 = sadd.s32 1, %s2685_s22  ;;  %p2344_p0 = scmp.ge.s32.totalorder %s2689_s23, 1  ;;  %s2689_s23 = sphi %s2731_s23, %s16_s23   ;;  %s2685_s22 = sphi %s2729_s22, %s4099_s22   ;;  %s2681_s21 = sphi %s2727_s21, %s4098_s21  }
   0x3   : > { %p30_p1 = scmp.ge.s32.totalorder %s28_s24, 2  ;;  %p267_p2 = scmp.lt.s32.totalorder %s2689_s23, 3 }
   0x5   : > { %s4101_s24 = smov (%p30_p1, %s28_s24), 0  ;;  %p268_p3 = pnand %p2344_p0, %p267_p2 }
   0x7   : > { %271 = sbr.rel (%p268_p3) target bundleno = 416 (0x1a0), region = 44 }
   0xc   : > { %p324_p4 = scmp.lt.s32.totalorder %s2681_s21, 1  ;;  %vm431_vm0 = vcmask 1043456   ;;  %v2764_v6 = vld [vmem:[%s3985_s4] sm:$0xff]  ;;  %vm424_vm1 = vcmask 31744   ;;  %v2795_v18 = vld [vmem:[%s3985_s4 + $0x8] sm:$0xff]  ;;  %v2691_v47 = vmov 0  }
   0xd   : > { %v1377_v45 = vld [vmem:[%s3986_s5] sm:$0xff]  ;;  %2522 = vset.pattern.permute.xlu0 %v2691_v47  ;;  %v1378_v50 = vld [vmem:[%s3986_s5 + $0x8] sm:$0xff] }
   0xe   : > { %s4103_s21 = smov (!%p324_p4, %s2681_s21), 1  ;;  %1381 = vperm.xlu0 %2522, %v1377_v45   ;;  %v363_v51 = vld [vmem:[%s3984_s3] sm:$0xff]  ;;  %v364_v52 = vld [vmem:[%s3984_s3 + $0x8] sm:$0xff] }
   0xf   : > { %s2495_s25 = smul.u32 72, %s4103_s21 }
  0x10   : > { %s2496_s20 = smul.u32 288, %s4103_s21 }
  0x11   : > { %s2753_s28 = scalar_lea.vmem %s3981_s0, %s2495_s25  ;;  %s2789_s9 = scalar_lea.vmem %s3982_s1, %s2495_s25 }
  0x12   : > { %v376_v0 = vld [vmem:[%s2753_s28] sm:$0xff]  ;;  %v377_v1 = vld [vmem:[%s2753_s28 + $0x8] sm:$0xff]  ;;  %v379_v2 = vld [vmem:[%s2753_s28 + $0x18] sm:$0xff]  ;;  %s3077_s27 = scalar_lea.vmem %s3983_s2, %s2496_s20  ;;  %s3567_s30 = scalar_lea.vmem %s3987_s6, %s2496_s20 }
  0x13   : > { %394 = vst [vmem:[#allocation1] ss:$2 sm:$0xff] %v376_v0  ;;  %v378_v3 = vld [vmem:[%s2753_s28 + $0x10] sm:$0xff]  ;;  %v380_v4 = vld [vmem:[%s2753_s28 + $0x20] sm:$0xff]  ;;  %v381_v5 = vld [vmem:[%s2753_s28 + $0x28] sm:$0xff] }
  0x14   : > { %396 = vst [vmem:[#allocation1 + $0x10] ss:$2 sm:$0xff] %v377_v1  ;;  %v383_v10 = vld [vmem:[%s2753_s28 + $0x38] sm:$0xff]  ;;  %v382_v14 = vld [vmem:[%s2753_s28 + $0x30] sm:$0xff]  ;;  %v384_v17 = vld [vmem:[%s2753_s28 + $0x40] sm:$0xff] }
  0x15   : > { %400 = vst [vmem:[#allocation1 + $0x30] ss:$2 sm:$0xff] %v379_v2  ;;  %v366_v19 = vld [vmem:[%s2789_s9 + $0x8] sm:$0xff]  ;;  %v368_v22 = vld [vmem:[%s2789_s9 + $0x18] sm:$0xff]  ;;  %v367_v25 = vld [vmem:[%s2789_s9 + $0x10] sm:$0xff] }
  0x16   : > { %398 = vst [vmem:[#allocation1 + $0x20] ss:$2 sm:$0xff] %v378_v3  ;;  %v365_v28 = vld [vmem:[%s2789_s9] sm:$0xff]  ;;  %v371_v37 = vld [vmem:[%s2789_s9 + $0x30] sm:$0xff]  ;;  %v370_v38 = vld [vmem:[%s2789_s9 + $0x28] sm:$0xff]  ;;  %1386 = vperm.xlu0 %2522, %v1378_v50  }
  0x17   : > { %v369_v33 = vld [vmem:[%s2789_s9 + $0x20] sm:$0xff]  ;;  %v372_v46 = vld [vmem:[%s2789_s9 + $0x38] sm:$0xff] }
  0x18   : > { %v373_v42 = vld [vmem:[%s2789_s9 + $0x40] sm:$0xff] }
  0x1a   : > { %v401_v7 = vld.sshfl [vmem:[#allocation1] sm:$0xff pattern:$0x75316420]  ;;  %v402_v8 = vld.sshfl [vmem:[#allocation1 + $0x8] sm:$0xff pattern:$0x75316420] }
  0x1b   : > { %2349 = vmatpush.msk.msra.mxu0 %vm431_vm0, %v401_v7  ;;  %409 = vst [vmem:[#allocation1] ss:$2 sm:$0xff] %v380_v4  ;;  %2352 = vmatpush.msk.msra.mxu1 %vm431_vm0, %v402_v8  ;;  %v403_v9 = vld.sshfl [vmem:[#allocation1 + $0x10] sm:$0xff pattern:$0x75316420] }
  0x1c   : > { %2355 = vmatpush.msk.msra.mxu2 %vm431_vm0, %v403_v9  ;;  %v404_v11 = vld.sshfl [vmem:[#allocation1 + $0x18] sm:$0xff pattern:$0x75316420]  ;;  %2350 = vmatmul.msk.f32.vlgmr.msra.gmra.mxu0 %vm424_vm1, %v2764_v6  ;;  %v407_v12 = vld.sshfl [vmem:[#allocation1 + $0x30] sm:$0xff pattern:$0x75316420] }
  0x1d   : > { %410 = vst [vmem:[#allocation1 + $0x10] ss:$2 sm:$0xff] %v381_v5  ;;  %2358 = vmatpush.msk.msra.mxu3 %vm431_vm0, %v404_v11  ;;  %2353 = vmatmul.msk.f32.vlgmr.msra.gmra.mxu1 %vm424_vm1, %v2764_v6  ;;  %v408_v13 = vld.sshfl [vmem:[#allocation1 + $0x38] sm:$0xff pattern:$0x75316420] }
  0x1e   : > { %2356 = vmatmul.msk.f32.vlgmr.msra.gmra.mxu2 %vm424_vm1, %v2764_v6  ;;  %2359 = vmatmul.msk.f32.vlgmr.msra.gmra.mxu3 %vm424_vm1, %v2764_v6  ;;  %412 = vst [vmem:[#allocation1 + $0x30] ss:$2 sm:$0xff] %v383_v10  ;;  %v405_v15 = vld.sshfl [vmem:[#allocation1 + $0x20] sm:$0xff pattern:$0x75316420] }
  0x1f   : > { %2367 = vmatpush.msk.msrb.mxu2 %vm431_vm0, %v407_v12  ;;  %2370 = vmatpush.msk.msrb.mxu3 %vm431_vm0, %v408_v13  ;;  %v406_v16 = vld.sshfl [vmem:[#allocation1 + $0x28] sm:$0xff pattern:$0x75316420] }
  0x20   : > { %2361 = vmatpush.msk.msrb.mxu0 %vm431_vm0, %v405_v15  ;;  %411 = vst [vmem:[#allocation1 + $0x20] ss:$2 sm:$0xff] %v382_v14  ;;  %2364 = vmatpush.msk.msrb.mxu1 %vm431_vm0, %v406_v16 }
  0x22   : > { %v413_v20 = vld.sshfl [vmem:[#allocation1] sm:$0xff pattern:$0x75316420]  ;;  %v414_v21 = vld.sshfl [vmem:[#allocation1 + $0x8] sm:$0xff pattern:$0x75316420] }
  0x23   : > { %2373 = vmatpush.msk.msra.mxu0 %vm431_vm0, %v413_v20  ;;  %421 = vst [vmem:[#allocation1] ss:$2 sm:$0xff] %v384_v17  ;;  %2376 = vmatpush.msk.msra.mxu1 %vm431_vm0, %v414_v21 }
  0x24   : > { %2351 = vmatmul.msk.f32.gmra.mxu0 %vm424_vm1, %v2795_v18  ;;  %v415_v23 = vld.sshfl [vmem:[#allocation1 + $0x10] sm:$0xff pattern:$0x75316420]  ;;  %v416_v24 = vld.sshfl [vmem:[#allocation1 + $0x18] sm:$0xff pattern:$0x75316420] }
  0x25   : > { %2354 = vmatmul.msk.f32.gmra.mxu1 %vm424_vm1, %v2795_v18  ;;  %2379 = vmatpush.msk.msra.mxu2 %vm431_vm0, %v415_v23  ;;  %893 = vst [vmem:[#allocation1 + $0x10] ss:$2 sm:$0xff] %v366_v19  ;;  %v419_v26 = vld.sshfl [vmem:[#allocation1 + $0x30] sm:$0xff pattern:$0x75316420] }
  0x26   : > { %2357 = vmatmul.msk.f32.gmra.mxu2 %vm424_vm1, %v2795_v18  ;;  %2360 = vmatmul.msk.f32.gmra.mxu3 %vm424_vm1, %v2795_v18  ;;  %v420_v27 = vld.sshfl [vmem:[#allocation1 + $0x38] sm:$0xff pattern:$0x75316420] }
  0x27   : > { %2382 = vmatpush.msk.msra.mxu3 %vm431_vm0, %v416_v24  ;;  %897 = vst [vmem:[#allocation1 + $0x30] ss:$2 sm:$0xff] %v368_v22  ;;  %v417_v29 = vld.sshfl [vmem:[#allocation1 + $0x20] sm:$0xff pattern:$0x75316420] }
  0x28   : > { %v418_v30 = vld.sshfl [vmem:[#allocation1 + $0x28] sm:$0xff pattern:$0x75316420] }
  0x29   : > { %895 = vst [vmem:[#allocation1 + $0x20] ss:$2 sm:$0xff] %v367_v25 }
  0x2a   : > { %v422_v31 = vld.sshfl [vmem:[#allocation1] sm:$0xff pattern:$0x75316420]  ;;  %v423_v32 = vld.sshfl [vmem:[#allocation1 + $0x8] sm:$0xff pattern:$0x75316420] }
  0x2b   : > { %891 = vst [vmem:[#allocation1] ss:$2 sm:$0xff] %v365_v28 }
  0x2c   : > { %2362 = vmatmul.msk.f32.vlgmr.msrb.gmra.mxu0 %vm424_vm1, %v2764_v6  ;;  %v900_v40 = vld.sshfl [vmem:[#allocation1 + $0x10] sm:$0xff pattern:$0x75316420]  ;;  %v901_v41 = vld.sshfl [vmem:[#allocation1 + $0x18] sm:$0xff pattern:$0x75316420] }
  0x2d   : > { %2365 = vmatmul.msk.f32.vlgmr.msrb.gmra.mxu1 %vm424_vm1, %v2764_v6  ;;  %2385 = vmatpush.msk.msrb.mxu0 %vm431_vm0, %v417_v29  ;;  %907 = vst [vmem:[#allocation1 + $0x10] ss:$2 sm:$0xff] %v370_v38 }
  0x2e   : > { %2368 = vmatmul.msk.f32.vlgmr.msrb.gmra.mxu2 %vm424_vm1, %v2764_v6  ;;  %2371 = vmatmul.msk.f32.vlgmr.msrb.gmra.mxu3 %vm424_vm1, %v2764_v6  ;;  %v904_v48 = vld.sshfl [vmem:[#allocation1 + $0x30] sm:$0xff pattern:$0x75316420]  ;;  %v905_v49 = vld.sshfl [vmem:[#allocation1 + $0x38] sm:$0xff pattern:$0x75316420] }
  0x2f   : > { %2391 = vmatpush.msk.msrb.mxu2 %vm431_vm0, %v419_v26  ;;  %2394 = vmatpush.msk.msrb.mxu3 %vm431_vm0, %v420_v27  ;;  %909 = vst [vmem:[#allocation1 + $0x30] ss:$2 sm:$0xff] %v372_v46 }
  0x30   : > { %2388 = vmatpush.msk.msrb.mxu1 %vm431_vm0, %v418_v30  ;;  %v902_v36 = vld.sshfl [vmem:[#allocation1 + $0x20] sm:$0xff pattern:$0x75316420]  ;;  %v903_v39 = vld.sshfl [vmem:[#allocation1 + $0x28] sm:$0xff pattern:$0x75316420] }
  0x31   : > { %908 = vst [vmem:[#allocation1 + $0x20] ss:$2 sm:$0xff] %v371_v37 }
  0x32   : > { %v898_v34 = vld.sshfl [vmem:[#allocation1] sm:$0xff pattern:$0x75316420]  ;;  %v899_v35 = vld.sshfl [vmem:[#allocation1 + $0x8] sm:$0xff pattern:$0x75316420] }
  0x33   : > { %906 = vst [vmem:[#allocation1] ss:$2 sm:$0xff] %v369_v33 }
  0x34   : > { %2363 = vmatmul.msk.f32.gmra.mxu0 %vm424_vm1, %v2795_v18  ;;  %v912_v53 = vld.sshfl [vmem:[#allocation1 + $0x10] sm:$0xff pattern:$0x75316420]  ;;  %v913_v56 = vld.sshfl [vmem:[#allocation1 + $0x18] sm:$0xff pattern:$0x75316420] }
  0x35   : > { %2366 = vmatmul.msk.f32.gmra.mxu1 %vm424_vm1, %v2795_v18 }
  0x36   : > { %2369 = vmatmul.msk.f32.gmra.mxu2 %vm424_vm1, %v2795_v18  ;;  %2372 = vmatmul.msk.f32.gmra.mxu3 %vm424_vm1, %v2795_v18  ;;  %v916_v57 = vld.sshfl [vmem:[#allocation1 + $0x30] sm:$0xff pattern:$0x75316420]  ;;  %v917_v60 = vld.sshfl [vmem:[#allocation1 + $0x38] sm:$0xff pattern:$0x75316420] }
  0x38   : > { %v914_v54 = vld.sshfl [vmem:[#allocation1 + $0x20] sm:$0xff pattern:$0x75316420]  ;;  %v915_v55 = vld.sshfl [vmem:[#allocation1 + $0x28] sm:$0xff pattern:$0x75316420] }
  0x3a   : > { %v910_v43 = vld.sshfl [vmem:[#allocation1] sm:$0xff pattern:$0x75316420]  ;;  %v911_v44 = vld.sshfl [vmem:[#allocation1 + $0x8] sm:$0xff pattern:$0x75316420] }
  0x3b   : > { %918 = vst [vmem:[#allocation1] ss:$2 sm:$0xff] %v373_v42 }
  0x3c   : > { %2374 = vmatmul.msk.f32.vlgmr.msra.gmra.mxu0 %vm424_vm1, %v2764_v6 }
  0x3d   : > { %2377 = vmatmul.msk.f32.vlgmr.msra.gmra.mxu1 %vm424_vm1, %v2764_v6  ;;  %2397 = vmatpush.msk.msra.mxu0 %vm431_vm0, %v422_v31 }
  0x3e   : > { %2380 = vmatmul.msk.f32.vlgmr.msra.gmra.mxu2 %vm424_vm1, %v2764_v6  ;;  %2383 = vmatmul.msk.f32.vlgmr.msra.gmra.mxu3 %vm424_vm1, %v2764_v6 }
  0x3f   : > { %2403 = vmatpush.msk.msra.mxu2 %vm431_vm0, %v898_v34  ;;  %2406 = vmatpush.msk.msra.mxu3 %vm431_vm0, %v899_v35 }
  0x40   : > { %2400 = vmatpush.msk.msra.mxu1 %vm431_vm0, %v423_v32 }
  0x42   : > { %v919_v58 = vld.sshfl [vmem:[#allocation1] sm:$0xff pattern:$0x75316420]  ;;  %v920_v59 = vld.sshfl [vmem:[#allocation1 + $0x8] sm:$0xff pattern:$0x75316420] }
  0x44   : > { %2375 = vmatmul.msk.f32.gmra.mxu0 %vm424_vm1, %v2795_v18 }
  0x45   : > { %2378 = vmatmul.msk.f32.gmra.mxu1 %vm424_vm1, %v2795_v18 }
  0x46   : > { %2381 = vmatmul.msk.f32.gmra.mxu2 %vm424_vm1, %v2795_v18  ;;  %2384 = vmatmul.msk.f32.gmra.mxu3 %vm424_vm1, %v2795_v18 }
  0x4c   : > { %2386 = vmatmul.msk.f32.vlgmr.msrb.gmra.mxu0 %vm424_vm1, %v2764_v6 }
  0x4d   : > { %2389 = vmatmul.msk.f32.vlgmr.msrb.gmra.mxu1 %vm424_vm1, %v2764_v6  ;;  %2409 = vmatpush.msk.msrb.mxu0 %vm431_vm0, %v900_v40 }
  0x4e   : > { %2392 = vmatmul.msk.f32.vlgmr.msrb.gmra.mxu2 %vm424_vm1, %v2764_v6  ;;  %2395 = vmatmul.msk.f32.vlgmr.msrb.gmra.mxu3 %vm424_vm1, %v2764_v6 }
  0x4f   : > { %2415 = vmatpush.msk.msrb.mxu2 %vm431_vm0, %v902_v36  ;;  %2418 = vmatpush.msk.msrb.mxu3 %vm431_vm0, %v903_v39 }
  0x50   : > { %2412 = vmatpush.msk.msrb.mxu1 %vm431_vm0, %v901_v41 }
  0x54   : > { %2387 = vmatmul.msk.f32.gmra.mxu0 %vm424_vm1, %v2795_v18 }
  0x55   : > { %2390 = vmatmul.msk.f32.gmra.mxu1 %vm424_vm1, %v2795_v18 }
  0x56   : > { %2393 = vmatmul.msk.f32.gmra.mxu2 %vm424_vm1, %v2795_v18  ;;  %2396 = vmatmul.msk.f32.gmra.mxu3 %vm424_vm1, %v2795_v18 }
  0x5c   : > { %2398 = vmatmul.msk.f32.vlgmr.msra.gmra.mxu0 %vm424_vm1, %v2764_v6 }
  0x5d   : > { %2401 = vmatmul.msk.f32.vlgmr.msra.gmra.mxu1 %vm424_vm1, %v2764_v6  ;;  %2421 = vmatpush.msk.msra.mxu0 %vm431_vm0, %v904_v48 }
  0x5e   : > { %2404 = vmatmul.msk.f32.vlgmr.msra.gmra.mxu2 %vm424_vm1, %v363_v51  ;;  %2407 = vmatmul.msk.f32.vlgmr.msra.gmra.mxu3 %vm424_vm1, %v363_v51 }
  0x5f   : > { %2427 = vmatpush.msk.msra.mxu2 %vm431_vm0, %v910_v43  ;;  %2430 = vmatpush.msk.msra.mxu3 %vm431_vm0, %v911_v44 }
  0x60   : > { %2424 = vmatpush.msk.msra.mxu1 %vm431_vm0, %v905_v49 }
  0x64   : > { %2399 = vmatmul.msk.f32.gmra.mxu0 %vm424_vm1, %v2795_v18 }
  0x65   : > { %2402 = vmatmul.msk.f32.gmra.mxu1 %vm424_vm1, %v2795_v18 }
  0x66   : > { %2405 = vmatmul.msk.f32.gmra.mxu2 %vm424_vm1, %v364_v52  ;;  %2408 = vmatmul.msk.f32.gmra.mxu3 %vm424_vm1, %v364_v52 }
  0x6c   : > { %2410 = vmatmul.msk.f32.vlgmr.msrb.gmra.mxu0 %vm424_vm1, %v363_v51 }
  0x6d   : > { %2413 = vmatmul.msk.f32.vlgmr.msrb.gmra.mxu1 %vm424_vm1, %v363_v51  ;;  %2433 = vmatpush.msk.msrb.mxu0 %vm431_vm0, %v912_v53 }
  0x6e   : > { %2416 = vmatmul.msk.f32.vlgmr.msrb.gmra.mxu2 %vm424_vm1, %v363_v51  ;;  %2419 = vmatmul.msk.f32.vlgmr.msrb.gmra.mxu3 %vm424_vm1, %v363_v51 }
  0x6f   : > { %2439 = vmatpush.msk.msrb.mxu2 %vm431_vm0, %v914_v54  ;;  %2442 = vmatpush.msk.msrb.mxu3 %vm431_vm0, %v915_v55 }
  0x70   : > { %2436 = vmatpush.msk.msrb.mxu1 %vm431_vm0, %v913_v56 }
  0x74   : > { %2411 = vmatmul.msk.f32.gmra.mxu0 %vm424_vm1, %v364_v52 }
  0x75   : > { %2414 = vmatmul.msk.f32.gmra.mxu1 %vm424_vm1, %v364_v52 }
  0x76   : > { %2417 = vmatmul.msk.f32.gmra.mxu2 %vm424_vm1, %v364_v52  ;;  %2420 = vmatmul.msk.f32.gmra.mxu3 %vm424_vm1, %v364_v52 }
  0x7c   : > { %2422 = vmatmul.msk.f32.vlgmr.msra.gmra.mxu0 %vm424_vm1, %v363_v51 }
  0x7d   : > { %2425 = vmatmul.msk.f32.vlgmr.msra.gmra.mxu1 %vm424_vm1, %v363_v51  ;;  %2445 = vmatpush.msk.msra.mxu0 %vm431_vm0, %v916_v57 }
  0x7e   : > { %2428 = vmatmul.msk.f32.vlgmr.msra.gmra.mxu2 %vm424_vm1, %v363_v51  ;;  %2431 = vmatmul.msk.f32.vlgmr.msra.gmra.mxu3 %vm424_vm1, %v363_v51 }
  0x7f   : > { %2451 = vmatpush.msk.msra.mxu2 %vm431_vm0, %v919_v58  ;;  %2454 = vmatpush.msk.msra.mxu3 %vm431_vm0, %v920_v59 }
  0x80   : > { %2448 = vmatpush.msk.msra.mxu1 %vm431_vm0, %v917_v60  ;;  %v3002_v31 = vpop.permute.xlu0 %1381 }
  0x84   : > { %2423 = vmatmul.msk.f32.gmra.mxu0 %vm424_vm1, %v364_v52 }
  0x85   : > { %2426 = vmatmul.msk.f32.gmra.mxu1 %vm424_vm1, %v364_v52 }
  0x86   : > { %2429 = vmatmul.msk.f32.gmra.mxu2 %vm424_vm1, %v364_v52  ;;  %2432 = vmatmul.msk.f32.gmra.mxu3 %vm424_vm1, %v364_v52 }
  0x88   : > { %v3010_v42 = vpop.permute.xlu0 %1386 }
  0x8c   : > { %2434 = vmatmul.msk.f32.vlgmr.msrb.gmra.mxu0 %vm424_vm1, %v363_v51 }
  0x8d   : > { %2437 = vmatmul.msk.f32.vlgmr.msrb.gmra.mxu1 %vm424_vm1, %v363_v51 }
  0x8e   : > { %2440 = vmatmul.msk.f32.vlgmr.msrb.gmra.mxu2 %vm424_vm1, %v363_v51  ;;  %2443 = vmatmul.msk.f32.vlgmr.msrb.gmra.mxu3 %vm424_vm1, %v363_v51 }
  0x94   : > { %2435 = vmatmul.msk.f32.gmra.mxu0 %vm424_vm1, %v364_v52 }
  0x95   : > { %2438 = vmatmul.msk.f32.gmra.mxu1 %vm424_vm1, %v364_v52 }
  0x96   : > { %2441 = vmatmul.msk.f32.gmra.mxu2 %vm424_vm1, %v364_v52  ;;  %2444 = vmatmul.msk.f32.gmra.mxu3 %vm424_vm1, %v364_v52 }
  0x99   : > { %v485_v61 = vpop.f32.mrf.mxu0 }
  0x9a   : > { %v508_v62 = vpop.f32.mrf.mxu1 }
  0x9c   : > { %2446 = vmatmul.msk.f32.vlgmr.msra.gmra.mxu0 %vm424_vm1, %v363_v51 }
  0x9d   : > { %2449 = vmatmul.msk.f32.vlgmr.msra.gmra.mxu1 %vm424_vm1, %v363_v51 }
  0x9e   : > { %2452 = vmatmul.msk.f32.vlgmr.msra.gmra.mxu2 %vm424_vm1, %v363_v51  ;;  %2455 = vmatmul.msk.f32.vlgmr.msra.gmra.mxu3 %vm424_vm1, %v363_v51 }
  0xa1   : > { %v531_v63 = vpop.f32.mrf.mxu2  ;;  %v554_v0 = vpop.f32.mrf.mxu3 }
  0xa2   : > { %v488_v1 = vpop.f32.mrf.mxu0  ;;  %v511_v2 = vpop.f32.mrf.mxu1 }
  0xa4   : > { %2447 = vmatmul.msk.f32.gmra.mxu0 %vm424_vm1, %v364_v52 }
  0xa5   : > { %2450 = vmatmul.msk.f32.gmra.mxu1 %vm424_vm1, %v364_v52 }
  0xa6   : > { %2453 = vmatmul.msk.f32.gmra.mxu2 %vm424_vm1, %v364_v52  ;;  %2456 = vmatmul.msk.f32.gmra.mxu3 %vm424_vm1, %v364_v52 }
  0xa9   : > { %v2946_v3 = vpop.f32.mrf.mxu2  ;;  %v2948_v4 = vpop.f32.mrf.mxu3 }
  0xaa   : > { %v2950_v5 = vpop.f32.mrf.mxu0  ;;  %v2952_v6 = vpop.f32.mrf.mxu1 }
  0xb1   : > { %v2954_v7 = vpop.f32.mrf.mxu2  ;;  %v2956_v8 = vpop.f32.mrf.mxu3 }
  0xb2   : > { %v2958_v9 = vpop.f32.mrf.mxu0  ;;  %v2960_v10 = vpop.f32.mrf.mxu1 }
  0xb9   : > { %v2962_v11 = vpop.f32.mrf.mxu2  ;;  %v2964_v12 = vpop.f32.mrf.mxu3 }
  0xba   : > { %v2966_v13 = vpop.f32.mrf.mxu0  ;;  %v2968_v14 = vpop.f32.mrf.mxu1 }
  0xc1   : > { %v2970_v15 = vpop.f32.mrf.mxu2  ;;  %v2972_v16 = vpop.f32.mrf.mxu3 }
  0xc2   : > { %v2974_v17 = vpop.f32.mrf.mxu0  ;;  %v2976_v18 = vpop.f32.mrf.mxu1 }
  0xc9   : > { %v2978_v19 = vpop.f32.mrf.mxu2  ;;  %v2980_v20 = vpop.f32.mrf.mxu3 }
  0xca   : > { %v2982_v21 = vpop.f32.mrf.mxu0  ;;  %v2984_v22 = vpop.f32.mrf.mxu1 }
  0xd1   : > { %v2986_v23 = vpop.f32.mrf.mxu2  ;;  %v2988_v24 = vpop.f32.mrf.mxu3 }
  0xd2   : > { %v2990_v25 = vpop.f32.mrf.mxu0  ;;  %v2992_v26 = vpop.f32.mrf.mxu1 }
  0xd9   : > { %v2994_v27 = vpop.f32.mrf.mxu2  ;;  %v2996_v28 = vpop.f32.mrf.mxu3 }
  0xda   : > { %3988 = vst [vmem:[#allocation2_spill] sm:$0xff] %v2994_v27  ;;  %v2998_v29 = vpop.f32.mrf.mxu0  ;;  %v3000_v30 = vpop.f32.mrf.mxu1 }
  0xdb   : > { %3989 = vst [vmem:[#allocation3_spill] sm:$0xff] %v2996_v28  ;;  %v3554_v28 = vld [vmem:[%s3077_s27 + $0x70] sm:$0xff] }
  0xdc   : > { %4050 = vst [vmem:[#allocation10_spill] sm:$0xff] %v3554_v28  ;;  %v3584_v28 = vld [vmem:[%s3077_s27 + $0x108] sm:$0xff] }
  0xdd   : > { %4057 = vst [vmem:[#allocation15_spill] sm:$0xff] %v3584_v28 }
  0xe1   : > { %v980_v32 = vpop.f32.mrf.mxu2  ;;  %v1003_v33 = vpop.f32.mrf.mxu3 }
  0xe2   : > { %v981_v34 = vadd.f32 %v980_v32, %v485_v61  ;;  %v1004_v35 = vadd.f32 %v1003_v33, %v508_v62  ;;  %v3004_v36 = vpop.f32.mrf.mxu0  ;;  %v3006_v37 = vpop.f32.mrf.mxu1 }
  0xe3   : > { %3990 = vst [vmem:[#allocation4_spill] sm:$0xff] %v3004_v36 }
  0xe4   : > { %3991 = vst [vmem:[#allocation5_spill] sm:$0xff] %v3006_v37  ;;  %v1389_v38 = vadd.f32 %v3002_v31, %v981_v34  ;;  %v1390_v39 = vadd.f32 %v3002_v31, %v1004_v35 }
  0xe6   : > { %v2457_v40 = vmul.f32 -1.442695, %v1389_v38  ;;  %v2458_v41 = vmul.f32 -1.442695, %v1390_v39 }
  0xe8   : > { %2523 = vpow2.f32 %v2457_v40 }
  0xe9   : > { %2525 = vpow2.f32 %v2458_v41  ;;  %v983_v43 = vpop.f32.mrf.mxu2  ;;  %v1006_v44 = vpop.f32.mrf.mxu3 }
  0xea   : > { %v984_v45 = vadd.f32 %v983_v43, %v488_v1  ;;  %v1007_v46 = vadd.f32 %v1006_v44, %v511_v2  ;;  %v1026_v47 = vpop.f32.mrf.mxu0  ;;  %v1049_v48 = vpop.f32.mrf.mxu1 }
  0xeb   : > { %v1027_v49 = vadd.f32 %v1026_v47, %v531_v63  ;;  %v1050_v52 = vadd.f32 %v1049_v48, %v554_v0 }
  0xec   : > { %v1407_v50 = vadd.f32 %v3010_v42, %v984_v45  ;;  %v1408_v51 = vadd.f32 %v3010_v42, %v1007_v46 }
  0xed   : > { %v1391_v53 = vadd.f32 %v3002_v31, %v1027_v49  ;;  %v1392_v61 = vadd.f32 %v3002_v31, %v1050_v52 }
  0xee   : > { %v2524_v54 = vpop.eup %2523  ;;  %v2475_v55 = vmul.f32 -1.442695, %v1407_v50  ;;  %v2476_v58 = vmul.f32 -1.442695, %v1408_v51 }
  0xef   : > { %v2526_v56 = vpop.eup %2525  ;;  %v1569_v57 = vadd.f32 1.0, %v2524_v54  ;;  %v2459_v60 = vmul.f32 -1.442695, %v1391_v53  ;;  %v2460_v0 = vmul.f32 -1.442695, %v1392_v61 }
  0xf0   : > { %v3015_v59 = vadd.f32 1.0, %v2526_v56  ;;  %2527 = vpow2.f32 %v2475_v55 }
  0xf1   : > { %2529 = vrcp.f32 %v1569_v57  ;;  %v1072_v62 = vpop.f32.mrf.mxu2  ;;  %v1095_v32 = vpop.f32.mrf.mxu3  ;;  %v1614_v47 = vand.u32 2147483647, %v1569_v57  ;;  %v1616_v51 = vand.u32 2147483648, %v1569_v57  ;;  %vm1610_vm2 = vweird.f32 %v1569_v57 }
  0xf2   : > { %2531 = vrcp.f32 %v3015_v59  ;;  %v1073_v63 = vadd.f32 %v1072_v62, %v2950_v5  ;;  %v1096_v41 = vadd.f32 %v1095_v32, %v2952_v6  ;;  %v1029_v43 = vpop.f32.mrf.mxu0  ;;  %v1629_v53 = vand.u32 2147483647, %v3015_v59  ;;  %v1052_v56 = vpop.f32.mrf.mxu1 }
  0xf3   : > { %2533 = vpow2.f32 %v2476_v58  ;;  %v1030_v52 = vadd.f32 %v1029_v43, %v2946_v3  ;;  %v1631_v54 = vand.u32 2147483648, %v3015_v59  ;;  %vm3049_vm4 = vcmp.eq.f32.partialorder %v1614_v47, 8.507059e+37 }
  0xf4   : > { %2535 = vpow2.f32 %v2459_v60  ;;  %v1393_v1 = vadd.f32 %v3002_v31, %v1073_v63  ;;  %v1394_v55 = vadd.f32 %v3002_v31, %v1096_v41  ;;  %vm1625_vm5 = vweird.f32 %v3015_v59 }
  0xf5   : > { %2537 = vpow2.f32 %v2460_v0  ;;  %v1617_v63 = vor.u32 1.1754944e-38, %v1616_v51  ;;  %v1409_v0 = vadd.f32 %v3010_v42, %v1030_v52  ;;  %vm3064_vm8 = vcmp.eq.f32.partialorder %v1629_v53, 8.507059e+37 }
  0xf6   : > { %v2528_v2 = vpop.eup %2527  ;;  %v2461_v35 = vmul.f32 -1.442695, %v1393_v1  ;;  %v1053_v1 = vadd.f32 %v1052_v56, %v2948_v4 }
  0xf7   : > { %v3021_v33 = vpop.eup %2529  ;;  %v3023_v34 = vadd.f32 1.0, %v2528_v2 }
  0xf8   : > { %v3025_v38 = vpop.eup %2531  ;;  %v1606_v39 = vmul.f32 %v3021_v33, %v1569_v57  ;;  %vm1611_vm3 = vweird.f32 %v3021_v33  ;;  %v1410_v53 = vadd.f32 %v3010_v42, %v1053_v1 }
  0xf9   : > { %v2534_v40 = vpop.eup %2533  ;;  %v1621_v5 = vmul.f32 %v3025_v38, %v3015_v59  ;;  %2539 = vrcp.f32 %v3023_v34  ;;  %vm1626_vm6 = vweird.f32 %v3025_v38  ;;  %vm3060_vm7 = vmor %vm1610_vm2, %vm1611_vm3  ;;  %v1884_v51 = vand.u32 2147483647, %v3023_v34 }
  0xfa   : > { %v2536_v44 = vpop.eup %2535  ;;  %v1607_v45 = vsub.f32 1.0, %v1606_v39  ;;  %v3032_v46 = vadd.f32 1.0, %v2534_v40  ;;  %2541 = vpow2.f32 %v2461_v35  ;;  %v1632_v39 = vor.u32 1.1754944e-38, %v1631_v54  ;;  %vm3084_vm9 = vmor %vm1625_vm5, %vm1626_vm6  ;;  %v1425_v54 = vld [vmem:[%s3077_s27] sm:$0xff] }
  0xfb   : > { %v1622_v48 = vsub.f32 1.0, %v1621_v5  ;;  %v3034_v49 = vadd.f32 1.0, %v2536_v44  ;;  %v2538_v58 = vpop.eup %2537  ;;  %v2462_v5 = vmul.f32 -1.442695, %v1394_v55  ;;  %v1886_v44 = vand.u32 2147483648, %v3023_v34 }
  0xfc   : > { %v1608_v50 = vmul.f32 %v3021_v33, %v1607_v45  ;;  %2543 = vrcp.f32 %v3032_v46  ;;  %v3068_v40 = vadd.f32 1.0, %v2538_v58  ;;  %v1901_v45 = vand.u32 2147483648, %v3032_v46  ;;  %v1075_v58 = vpop.f32.mrf.mxu2 }
  0xfd   : > { %v1623_v6 = vmul.f32 %v3025_v38, %v1622_v48  ;;  %2545 = vrcp.f32 %v3034_v49  ;;  %v1646_v52 = vand.u32 2147483648, %v3034_v49  ;;  %vm1880_vm10 = vweird.f32 %v3023_v34 }
  0xfe   : > { %v1609_v60 = vadd.f32 %v3021_v33, %v1608_v50  ;;  %2547 = vrcp.f32 %v3068_v40  ;;  %v1644_v3 = vand.u32 2147483647, %v3034_v49  ;;  %vm1895_vm12 = vweird.f32 %v3032_v46 }
  0xff   : > { %v3047_v61 = vpop.eup %2539  ;;  %v1624_v62 = vadd.f32 %v3025_v38, %v1623_v6  ;;  %v2477_v6 = vmul.f32 -1.442695, %v1409_v0  ;;  %v1899_v0 = vand.u32 2147483647, %v3032_v46  ;;  %v3120_v1 = vor.u32 1.1754944e-38, %v1901_v45 }
 0x100   : > { %v1876_v57 = vmul.f32 %v3047_v61, %v3023_v34  ;;  %v2542_v2 = vpop.eup %2541  ;;  %v1613_v4 = vsel %vm3060_vm7, %v3021_v33, %v1609_v60  ;;  %v1426_v60 = vld [vmem:[%s3077_s27 + $0x8] sm:$0xff]  ;;  %vm1881_vm11 = vweird.f32 %v3047_v61  ;;  %vm1640_vm13 = vweird.f32 %v3034_v49 }
 0x101   : > { %v3090_v47 = vadd.f32 1.0, %v2542_v2  ;;  %v1628_v48 = vsel %vm3084_vm9, %v3025_v38, %v1624_v62  ;;  %v1618_v38 = vsel %vm3049_vm4, %v1617_v63, %v1613_v4  ;;  %v3125_v35 = vor.u32 1.1754944e-38, %v1646_v52  ;;  %vm3166_vm4 = vmor %vm1880_vm10, %vm1881_vm11 }
 0x102   : > { %v3070_v41 = vpop.eup %2543  ;;  %v1877_v50 = vsub.f32 1.0, %v1876_v57  ;;  %v1633_v62 = vsel %vm3064_vm8, %v1632_v39, %v1628_v48  ;;  %v3113_v57 = vor.u32 1.1754944e-38, %v1886_v44  ;;  %v3122_v32 = vmul.f32 %v1618_v38, %v1425_v54  ;;  %v1443_v38 = vld [vmem:[%s3077_s27 + $0x90] sm:$0xff] }
 0x103   : > { %v1891_v33 = vmul.f32 %v3070_v41, %v3032_v46  ;;  %v3098_v59 = vpop.eup %2545  ;;  %2549 = vrcp.f32 %v3090_v47  ;;  %v1076_v39 = vadd.f32 %v1075_v58, %v2958_v9  ;;  %v3130_v43 = vmul.f32 %v1633_v62, %v1426_v60 }
 0x104   : > { %v1636_v56 = vmul.f32 %v3098_v59, %v3034_v49  ;;  %v1878_v63 = vmul.f32 %v3047_v61, %v1877_v50  ;;  %2551 = vpow2.f32 %v2462_v5  ;;  %v3128_v4 = vpop.eup %2547  ;;  %vm1896_vm14 = vweird.f32 %v3070_v41 }
 0x105   : > { %v1892_v55 = vsub.f32 1.0, %v1891_v33  ;;  %v2478_v45 = vmul.f32 -1.442695, %v1410_v53  ;;  %vm3134_vm15 = vcmp.eq.f32.partialorder %v1884_v51, 8.507059e+37  ;;  %v1651_v5 = vmul.f32 %v3128_v4, %v3068_v40  ;;  %v1098_v53 = vpop.f32.mrf.mxu3  ;;  %vm3183_vm5 = vmor %vm1895_vm12, %vm1896_vm14 }
 0x106   : > { %v1637_v2 = vsub.f32 1.0, %v1636_v56  ;;  %vm1655_vm0 = vweird.f32 %v3068_v40  ;;  %v1659_v9 = vand.u32 2147483647, %v3068_v40  ;;  %v1879_v52 = vadd.f32 %v3047_v61, %v1878_v63 }
 0x107   : > { %v1893_v44 = vmul.f32 %v3070_v41, %v1892_v55  ;;  %v1661_v54 = vand.u32 2147483648, %v3068_v40  ;;  %2553 = vpow2.f32 %v2477_v6  ;;  %v1411_v51 = vadd.f32 %v3010_v42, %v1076_v39  ;;  %v1118_v6 = vpop.f32.mrf.mxu0  ;;  %v1444_v55 = vld [vmem:[%s3077_s27 + $0x98] sm:$0xff] }
 0x108   : > { %v1638_v50 = vmul.f32 %v3098_v59, %v1637_v2  ;;  %vm3148_vm1 = vcmp.eq.f32.partialorder %v1899_v0, 8.507059e+37  ;;  %vm1641_vm2 = vweird.f32 %v3098_v59  ;;  %vm3153_vm3 = vcmp.eq.f32.partialorder %v1644_v3, 8.507059e+37 }
 0x109   : > { %v3143_v33 = vpop.eup %2549  ;;  %v1652_v56 = vsub.f32 1.0, %v1651_v5  ;;  %v1674_v60 = vand.u32 2147483647, %v3090_v47  ;;  %v1894_v62 = vadd.f32 %v3070_v41, %v1893_v44  ;;  %v1676_v0 = vand.u32 2147483648, %v3090_v47  ;;  %vm3198_vm7 = vmor %vm1640_vm13, %vm1641_vm2 }
 0x10a   : > { %v1666_v58 = vmul.f32 %v3143_v33, %v3090_v47  ;;  %2555 = vpow2.f32 %v2478_v45  ;;  %v2479_v63 = vmul.f32 -1.442695, %v1411_v51  ;;  %v2552_v2 = vpop.eup %2551  ;;  %v1639_v39 = vadd.f32 %v3098_v59, %v1638_v50 }
 0x10b   : > { %v1653_v5 = vmul.f32 %v3128_v4, %v1652_v56  ;;  %v1099_v44 = vadd.f32 %v1098_v53, %v2960_v10  ;;  %v1883_v45 = vsel %vm3166_vm4, %v3047_v61, %v1879_v52  ;;  %v3176_v51 = vadd.f32 1.0, %v2552_v2  ;;  %v1428_v53 = vld [vmem:[%s3077_s27 + $0x18] sm:$0xff] }
 0x10c   : > { %v1667_v37 = vsub.f32 1.0, %v1666_v58  ;;  %2557 = vpow2.f32 %v2479_v63  ;;  %v1119_v34 = vadd.f32 %v1118_v6, %v2954_v7  ;;  %vm1656_vm6 = vweird.f32 %v3128_v4 }
 0x10d   : > { %v1654_v56 = vadd.f32 %v3128_v4, %v1653_v5  ;;  %v1412_v61 = vadd.f32 %v3010_v42, %v1099_v44  ;;  %v2554_v52 = vpop.eup %2553  ;;  %v1898_v7 = vsel %vm3183_vm5, %v3070_v41, %v1894_v62  ;;  %vm3202_vm8 = vcmp.eq.f32.partialorder %v1659_v9, 8.507059e+37  ;;  %vm3221_vm10 = vmor %vm1655_vm0, %vm1656_vm6 }
 0x10e   : > { %v1668_v10 = vmul.f32 %v3143_v33, %v1667_v37  ;;  %vm1671_vm9 = vweird.f32 %v3143_v33  ;;  %2559 = vrcp.f32 %v3176_v51  ;;  %v1643_v37 = vsel %vm3198_vm7, %v3098_v59, %v1639_v39 }
 0x10f   : > { %v3212_v58 = vadd.f32 1.0, %v2554_v52  ;;  %v2480_v49 = vmul.f32 -1.442695, %v1412_v61  ;;  %v1888_v9 = vsel %vm3134_vm15, %v3113_v57, %v1883_v45  ;;  %v1662_v63 = vor.u32 1.1754944e-38, %v1661_v54  ;;  %v1141_v54 = vpop.f32.mrf.mxu1 }
 0x110   : > { %v1669_v41 = vadd.f32 %v3143_v33, %v1668_v10  ;;  %v2556_v6 = vpop.eup %2555  ;;  %vm1670_vm11 = vweird.f32 %v3090_v47  ;;  %v1395_v59 = vadd.f32 %v3002_v31, %v1119_v34  ;;  %v1658_v2 = vsel %vm3221_vm10, %v3128_v4, %v1654_v56  ;;  %v1427_v34 = vld [vmem:[%s3077_s27 + $0x10] sm:$0xff] }
 0x111   : > { %vm3230_vm12 = vmor %vm1670_vm11, %vm1671_vm9  ;;  %vm3234_vm13 = vcmp.eq.f32.partialorder %v1674_v60, 8.507059e+37  ;;  %v1677_v40 = vor.u32 1.1754944e-38, %v1676_v0  ;;  %2561 = vrcp.f32 %v3212_v58  ;;  %v1903_v4 = vsel %vm3148_vm1, %v3120_v1, %v1898_v7 }
 0x112   : > { %v2558_v47 = vpop.eup %2557  ;;  %v1648_v3 = vsel %vm3153_vm3, %v3125_v35, %v1643_v37  ;;  %v1673_v60 = vsel %vm3230_vm12, %v3143_v33, %v1669_v41  ;;  %v3248_v0 = vadd.f32 1.0, %v2556_v6  ;;  %v1691_v39 = vand.u32 2147483648, %v3176_v51  ;;  %v1429_v37 = vld [vmem:[%s3077_s27 + $0x20] sm:$0xff] }
 0x113   : > { %v3251_v5 = vadd.f32 1.0, %v2558_v47  ;;  %2563 = vpow2.f32 %v2480_v49  ;;  %v2463_v44 = vmul.f32 -1.442695, %v1395_v59  ;;  %v1663_v1 = vsel %vm3202_vm8, %v1662_v63, %v1658_v2 }
 0x114   : > { %v3253_v45 = vpop.eup %2559  ;;  %v1689_v35 = vand.u32 2147483647, %v3176_v51  ;;  %2565 = vrcp.f32 %v3248_v0  ;;  %v1142_v33 = vadd.f32 %v1141_v54, %v2956_v8  ;;  %v1678_v50 = vsel %vm3234_vm13, %v1677_v40, %v1673_v60  ;;  %v1164_v54 = vpop.f32.mrf.mxu2 }
 0x115   : > { %v1681_v56 = vmul.f32 %v3253_v45, %v3176_v51  ;;  %v1914_v10 = vand.u32 2147483647, %v3212_v58  ;;  %v1916_v61 = vand.u32 2147483648, %v3212_v58  ;;  %v3269_v52 = vmul.f32 %v1888_v9, %v1443_v38  ;;  %v1430_v9 = vld [vmem:[%s3077_s27 + $0x28] sm:$0xff] }
 0x116   : > { %v3271_v7 = vmul.f32 %v1903_v4, %v1444_v55  ;;  %v3273_v46 = vmul.f32 %v1648_v3, %v1427_v34  ;;  %2567 = vrcp.f32 %v3251_v5  ;;  %vm1685_vm14 = vweird.f32 %v3176_v51 }
 0x117   : > { %v3276_v8 = vpop.eup %2561  ;;  %v1682_v41 = vsub.f32 1.0, %v1681_v56  ;;  %v1692_v49 = vor.u32 1.1754944e-38, %v1691_v39  ;;  %2569 = vpow2.f32 %v2463_v44  ;;  %v3281_v6 = vmul.f32 %v1663_v1, %v1428_v53 }
 0x118   : > { %v3283_v62 = vmul.f32 %v1678_v50, %v1429_v37  ;;  %vm3285_vm15 = vcmp.eq.f32.partialorder %v1689_v35, 8.507059e+37  ;;  %v1906_v63 = vmul.f32 %v3276_v8, %v3212_v58  ;;  %vm1910_vm0 = vweird.f32 %v3212_v58  ;;  %v1187_v35 = vpop.f32.mrf.mxu3  ;;  %v1121_v50 = vpop.f32.mrf.mxu0 }
 0x119   : > { %v2564_v59 = vpop.eup %2563  ;;  %v1683_v2 = vmul.f32 %v3253_v45, %v1682_v41  ;;  %vm3293_vm1 = vcmp.eq.f32.partialorder %v1914_v10, 8.507059e+37  ;;  %v1917_v57 = vor.u32 1.1754944e-38, %v1916_v61  ;;  %v1396_v40 = vadd.f32 %v3002_v31, %v1142_v33  ;;  %v1445_v10 = vld [vmem:[%s3077_s27 + $0xa0] sm:$0xff] }
 0x11a   : > { %v3298_v47 = vpop.eup %2565  ;;  %vm1686_vm2 = vweird.f32 %v3253_v45  ;;  %v1907_v4 = vsub.f32 1.0, %v1906_v63  ;;  %v1931_v3 = vand.u32 2147483648, %v3248_v0  ;;  %v3302_v60 = vadd.f32 1.0, %v2564_v59 }
 0x11b   : > { %v1684_v39 = vadd.f32 %v3253_v45, %v1683_v2  ;;  %vm1911_vm3 = vweird.f32 %v3276_v8  ;;  %v1921_v44 = vmul.f32 %v3298_v47, %v3248_v0  ;;  %v1929_v1 = vand.u32 2147483647, %v3248_v0  ;;  %vm3319_vm5 = vmor %vm1685_vm14, %vm1686_vm2 }
 0x11c   : > { %v3309_v33 = vpop.eup %2567  ;;  %v1908_v38 = vmul.f32 %v3276_v8, %v1907_v4  ;;  %vm1925_vm4 = vweird.f32 %v3248_v0  ;;  %2571 = vrcp.f32 %v3302_v60  ;;  %v2464_v55 = vmul.f32 -1.442695, %v1396_v40  ;;  %vm3339_vm7 = vmor %vm1910_vm0, %vm1911_vm3 }
 0x11d   : > { %v1165_v34 = vadd.f32 %v1164_v54, %v2966_v13  ;;  %v2570_v56 = vpop.eup %2569  ;;  %v1922_v61 = vsub.f32 1.0, %v1921_v44  ;;  %v1936_v53 = vmul.f32 %v3309_v33, %v3251_v5  ;;  %v1944_v37 = vand.u32 2147483647, %v3251_v5 }
 0x11e   : > { %v1946_v41 = vand.u32 2147483648, %v3251_v5  ;;  %v1688_v13 = vsel %vm3319_vm5, %v3253_v45, %v1684_v39  ;;  %v1909_v63 = vadd.f32 %v3276_v8, %v1908_v38  ;;  %v3331_v59 = vor.u32 1.1754944e-38, %v1931_v3  ;;  %v1144_v3 = vpop.f32.mrf.mxu1 }
 0x11f   : > { %vm1940_vm6 = vweird.f32 %v3251_v5  ;;  %v1188_v51 = vadd.f32 %v1187_v35, %v2968_v14  ;;  %v1923_v40 = vmul.f32 %v3298_v47, %v1922_v61  ;;  %v1937_v54 = vsub.f32 1.0, %v1936_v53 }
 0x120   : > { %v3344_v45 = vadd.f32 1.0, %v2570_v56  ;;  %v1122_v4 = vadd.f32 %v1121_v50, %v2962_v11  ;;  %v1913_v14 = vsel %vm3339_vm7, %v3276_v8, %v1909_v63  ;;  %v1959_v39 = vand.u32 2147483647, %v3302_v60 }
 0x121   : > { %2573 = vpow2.f32 %v2464_v55  ;;  %v1397_v58 = vadd.f32 %v3002_v31, %v1165_v34  ;;  %v1693_v44 = vsel %vm3285_vm15, %v1692_v49, %v1688_v13  ;;  %v1938_v35 = vmul.f32 %v3309_v33, %v1937_v54  ;;  %v1446_v55 = vld [vmem:[%s3077_s27 + $0xa8] sm:$0xff] }
 0x122   : > { %v1961_v38 = vand.u32 2147483648, %v3302_v60  ;;  %2575 = vrcp.f32 %v3344_v45  ;;  %v3357_v11 = vpop.eup %2571  ;;  %v1918_v8 = vsel %vm3293_vm1, %v1917_v57, %v1913_v14  ;;  %v1924_v50 = vadd.f32 %v3298_v47, %v1923_v40 }
 0x123   : > { %vm1926_vm8 = vweird.f32 %v3298_v47  ;;  %vm3363_vm9 = vcmp.eq.f32.partialorder %v1929_v1, 8.507059e+37  ;;  %v1145_v49 = vadd.f32 %v1144_v3, %v2964_v12  ;;  %vm3369_vm10 = vcmp.eq.f32.partialorder %v1944_v37, 8.507059e+37 }
 0x124   : > { %v1947_v56 = vor.u32 1.1754944e-38, %v1946_v41  ;;  %v1951_v48 = vmul.f32 %v3357_v11, %v3302_v60  ;;  %vm1955_vm11 = vweird.f32 %v3302_v60  ;;  %v3376_v57 = vmul.f32 %v1693_v44, %v1430_v9  ;;  %vm3385_vm13 = vmor %vm1925_vm4, %vm1926_vm8  ;;  %v3531_v41 = vld [vmem:[%s3077_s27 + $0xe0] sm:$0xff] }
 0x125   : > { %v1939_v1 = vadd.f32 %v3309_v33, %v1938_v35  ;;  %vm1941_vm12 = vweird.f32 %v3309_v33  ;;  %v2465_v61 = vmul.f32 -1.442695, %v1397_v58  ;;  %v3381_v12 = vmul.f32 %v1918_v8, %v1445_v10  ;;  %v1167_v58 = vpop.f32.mrf.mxu2  ;;  %4046 = vst [vmem:[#allocation6_spill] sm:$0xff] %v3531_v41 }
 0x126   : > { %v1952_v37 = vsub.f32 1.0, %v1951_v48  ;;  %vm3389_vm14 = vcmp.eq.f32.partialorder %v1959_v39, 8.507059e+37  ;;  %v1962_v13 = vor.u32 1.1754944e-38, %v1961_v38  ;;  %v1398_v63 = vadd.f32 %v3002_v31, %v1188_v51  ;;  %vm3403_vm15 = vmor %vm1940_vm6, %vm1941_vm12 }
 0x127   : > { %v2574_v2 = vpop.eup %2573  ;;  %v1928_v40 = vsel %vm3385_vm13, %v3298_v47, %v1924_v50  ;;  %2577 = vpow2.f32 %v2465_v61  ;;  %v1413_v0 = vadd.f32 %v3010_v42, %v1122_v4  ;;  %v1414_v54 = vadd.f32 %v3010_v42, %v1145_v49 }
 0x128   : > { %v3399_v3 = vpop.eup %2575  ;;  %v1953_v51 = vmul.f32 %v3357_v11, %v1952_v37  ;;  %vm1956_vm0 = vweird.f32 %v3357_v11  ;;  %v3409_v39 = vadd.f32 1.0, %v2574_v2  ;;  %v2466_v47 = vmul.f32 -1.442695, %v1398_v63  ;;  %v1190_v37 = vpop.f32.mrf.mxu3  ;;  %v1447_v63 = vld [vmem:[%s3077_s27 + $0xb0] sm:$0xff] }
 0x129   : > { %v1943_v4 = vsel %vm3403_vm15, %v3309_v33, %v1939_v1  ;;  %v1696_v44 = vmul.f32 %v3399_v3, %v3344_v45  ;;  %v2481_v5 = vmul.f32 -1.442695, %v1413_v0  ;;  %v2482_v35 = vmul.f32 -1.442695, %v1414_v54  ;;  %vm3422_vm2 = vmor %vm1955_vm11, %vm1956_vm0 }
 0x12a   : > { %v1954_v38 = vadd.f32 %v3357_v11, %v1953_v51  ;;  %vm1700_vm1 = vweird.f32 %v3344_v45  ;;  %v1704_v8 = vand.u32 2147483647, %v3344_v45  ;;  %2579 = vrcp.f32 %v3409_v39 }
 0x12b   : > { %v1697_v33 = vsub.f32 1.0, %v1696_v44  ;;  %v1706_v49 = vand.u32 2147483648, %v3344_v45  ;;  %2581 = vpow2.f32 %v2466_v47  ;;  %v1168_v9 = vadd.f32 %v1167_v58, %v2974_v17  ;;  %v1448_v58 = vld [vmem:[%s3077_s27 + $0xb8] sm:$0xff] }
 0x12c   : > { %v1933_v48 = vsel %vm3363_vm9, %v3331_v59, %v1928_v40  ;;  %v1948_v10 = vsel %vm3369_vm10, %v1947_v56, %v1943_v4  ;;  %v1958_v60 = vsel %vm3422_vm2, %v3357_v11, %v1954_v38  ;;  %2583 = vpow2.f32 %v2481_v5  ;;  %v1210_v5 = vpop.f32.mrf.mxu0  ;;  %v3513_v59 = vld [vmem:[%s3077_s27 + $0xd0] sm:$0xff] }
 0x12d   : > { %v2578_v1 = vpop.eup %2577  ;;  %v1698_v61 = vmul.f32 %v3399_v3, %v1697_v33  ;;  %v1719_v53 = vand.u32 2147483647, %v3409_v39  ;;  %v1721_v17 = vand.u32 2147483648, %v3409_v39  ;;  %2585 = vpow2.f32 %v2482_v35 }
 0x12e   : > { %vm1701_vm3 = vweird.f32 %v3399_v3  ;;  %vm3441_vm4 = vcmp.eq.f32.partialorder %v1704_v8, 8.507059e+37  ;;  %v3445_v34 = vadd.f32 1.0, %v2578_v1  ;;  %v1415_v11 = vadd.f32 %v3010_v42, %v1168_v9 }
 0x12f   : > { %v3448_v56 = vmul.f32 %v1933_v48, %v1446_v55  ;;  %v1963_v2 = vsel %vm3389_vm14, %v1962_v13, %v1958_v60  ;;  %v1699_v40 = vadd.f32 %v3399_v3, %v1698_v61  ;;  %v1707_v0 = vor.u32 1.1754944e-38, %v1706_v49  ;;  %vm3466_vm6 = vmor %vm1700_vm1, %vm1701_vm3  ;;  %v1256_v60 = vpop.f32.mrf.mxu2  ;;  %v1431_v61 = vld [vmem:[%s3077_s27 + $0x30] sm:$0xff]  ;;  %v3499_v55 = vld [vmem:[%s3077_s27 + $0x40] sm:$0xff] }
 0x130   : > { %v3454_v54 = vpop.eup %2579  ;;  %v3456_v14 = vmul.f32 %v1948_v10, %v1447_v63  ;;  %vm1715_vm5 = vweird.f32 %v3409_v39  ;;  %2587 = vrcp.f32 %v3445_v34  ;;  %v1191_v51 = vadd.f32 %v1190_v37, %v2976_v18  ;;  %v1233_v10 = vpop.f32.mrf.mxu1 }
 0x131   : > { %v2582_v47 = vpop.eup %2581  ;;  %v1711_v13 = vmul.f32 %v3454_v54, %v3409_v39  ;;  %vm3472_vm7 = vcmp.eq.f32.partialorder %v1719_v53, 8.507059e+37  ;;  %v3476_v44 = vor.u32 1.1754944e-38, %v1721_v17  ;;  %v2483_v18 = vmul.f32 -1.442695, %v1415_v11  ;;  %v1432_v17 = vld [vmem:[%s3077_s27 + $0x38] sm:$0xff]  ;;  %v3502_v11 = vld [vmem:[%s3077_s27 + $0x48] sm:$0xff] }
 0x132   : > { %v2584_v35 = vpop.eup %2583  ;;  %v3478_v38 = vmul.f32 %v1963_v2, %v1448_v58  ;;  %v1703_v45 = vsel %vm3466_vm6, %v3399_v3, %v1699_v40  ;;  %v1734_v8 = vand.u32 2147483647, %v3445_v34  ;;  %v3484_v50 = vadd.f32 1.0, %v2582_v47  ;;  %v3506_v2 = vld [vmem:[%s3077_s27 + $0xc0] sm:$0xff]  ;;  %v3516_v40 = vld [vmem:[%s3077_s27 + $0xd8] sm:$0xff]  ;;  %v3528_v58 = vld [vmem:[%s3077_s27 + $0x68] sm:$0xff] }
 0x133   : > { %v2586_v33 = vpop.eup %2585  ;;  %v1712_v49 = vsub.f32 1.0, %v1711_v13  ;;  %v1736_v9 = vand.u32 2147483648, %v3445_v34  ;;  %v3487_v48 = vadd.f32 1.0, %v2584_v35  ;;  %2589 = vpow2.f32 %v2483_v18  ;;  %v3525_v47 = vld [vmem:[%s3077_s27 + $0x60] sm:$0xff]  ;;  %v3534_v13 = vld [vmem:[%s3077_s27 + $0xe8] sm:$0xff]  ;;  %v3537_v18 = vld [vmem:[%s3077_s27 + $0xf0] sm:$0xff] }
 0x134   : > { %vm1716_vm8 = vweird.f32 %v3454_v54  ;;  %2591 = vrcp.f32 %v3484_v50  ;;  %v1416_v3 = vadd.f32 %v3010_v42, %v1191_v51  ;;  %v1211_v1 = vadd.f32 %v1210_v5, %v2970_v15  ;;  %v3510_v15 = vld [vmem:[%s3077_s27 + $0xc8] sm:$0xff]  ;;  %v3522_v51 = vld [vmem:[%s3077_s27 + $0x58] sm:$0xff]  ;;  %4047 = vst [vmem:[#allocation7_spill] sm:$0xff] %v3534_v13 }
 0x135   : > { %v1708_v53 = vsel %vm3441_vm4, %v1707_v0, %v1703_v45  ;;  %v1713_v37 = vmul.f32 %v3454_v54, %v1712_v49  ;;  %v1751_v63 = vand.u32 2147483648, %v3484_v50  ;;  %2593 = vrcp.f32 %v3487_v48  ;;  %v3519_v0 = vld [vmem:[%s3077_s27 + $0x50] sm:$0xff]  ;;  %4048 = vst [vmem:[#allocation8_spill] sm:$0xff] %v3537_v18  ;;  %v3540_v5 = vld [vmem:[%s3077_s27 + $0xf8] sm:$0xff]  ;;  %vm1717_vm11 = vmor %vm1715_vm5, %vm1716_vm8 }
 0x136   : > { %4049 = vst [vmem:[#allocation9_spill] sm:$0xff] %v3540_v5  ;;  %v3542_v35 = vpop.eup %2587  ;;  %vm1730_vm9 = vweird.f32 %v3445_v34  ;;  %v3545_v45 = vadd.f32 1.0, %v2586_v33  ;;  %v3548_v49 = vadd.f32 %v1233_v10, %v2972_v16  ;;  %v3551_v36 = vadd.f32 %v1256_v60, %v2982_v21  ;;  %v3557_v18 = vld [vmem:[%s3077_s27 + $0x78] sm:$0xff]  ;;  %v3560_v5 = vld [vmem:[%s3077_s27 + $0x80] sm:$0xff] }
 0x137   : > { %4051 = vst [vmem:[#allocation11_spill] sm:$0xff] %v3557_v18  ;;  %v1714_v33 = vadd.f32 %v3454_v54, %v1713_v37  ;;  %v1726_v16 = vmul.f32 %v3542_v35, %v3445_v34  ;;  %vm3572_vm10 = vcmp.eq.f32.partialorder %v1734_v8, 8.507059e+37  ;;  %v1737_v10 = vor.u32 1.1754944e-38, %v1736_v9  ;;  %v3581_v18 = vld [vmem:[%s3077_s27 + $0x100] sm:$0xff]  ;;  %v3594_v9 = vld [vmem:[%s3077_s27 + $0x110] sm:$0xff] }
 0x138   : > { %4052 = vst [vmem:[#allocation12_spill] sm:$0xff] %v3560_v5  ;;  %v1749_v60 = vand.u32 2147483647, %v3484_v50  ;;  %v3578_v5 = vld [vmem:[%s3077_s27 + $0x88] sm:$0xff]  ;;  %v2151_v13 = vmul.f32 %v1708_v53, %v1431_v61  ;;  %v1974_v8 = vand.u32 2147483647, %v3487_v48  ;;  %2595 = vrcp.f32 %v3545_v45 }
 0x139   : > { %4055 = vst [vmem:[#allocation13_spill] sm:$0xff] %v3578_v5  ;;  %v1976_v37 = vand.u32 2147483648, %v3487_v48  ;;  %v2590_v5 = vpop.eup %2589  ;;  %v1727_v27 = vsub.f32 1.0, %v1726_v16  ;;  %vm1745_vm12 = vweird.f32 %v3484_v50  ;;  %v3598_v61 = vor.u32 1.1754944e-38, %v1751_v63  ;;  %v3602_v53 = vld [vmem:[%s3077_s27 + $0x118] sm:$0xff] }
 0x13a   : > { %4056 = vst [vmem:[#allocation14_spill] sm:$0xff] %v3581_v18  ;;  %v1718_v18 = vsel %vm1717_vm11, %v3454_v54, %v1714_v33  ;;  %v1991_v39 = vand.u32 2147483648, %v3545_v45  ;;  %v3604_v28 = vpop.eup %2591  ;;  %vm1970_vm13 = vweird.f32 %v3487_v48  ;;  %v2484_v54 = vmul.f32 -1.442695, %v1416_v3 }
 0x13b   : > { %4058 = vst [vmem:[#allocation16_spill] sm:$0xff] %v3594_v9  ;;  %v1723_v41 = vsel %vm3472_vm7, %v3476_v44, %v1718_v18  ;;  %v3610_v9 = vadd.f32 1.0, %v2590_v5  ;;  %v1399_v63 = vadd.f32 %v3002_v31, %v1211_v1  ;;  %v3615_v33 = vpop.eup %2593  ;;  %v1728_v16 = vmul.f32 %v3542_v35, %v1727_v27 }
 0x13c   : > { %2181 = vst [vmem:[%s3567_s30] sm:$0xff] %v3122_v32  ;;  %vm1731_vm14 = vweird.f32 %v3542_v35  ;;  %v1741_v4 = vmul.f32 %v3604_v28, %v3484_v50  ;;  %vm3621_vm15 = vcmp.eq.f32.partialorder %v1749_v60, 8.507059e+37  ;;  %v1989_v3 = vand.u32 2147483647, %v3545_v45 }
 0x13d   : > { %2182 = vst [vmem:[%s3567_s30 + $0x8] sm:$0xff] %v3130_v43  ;;  %v2152_v1 = vmul.f32 %v1723_v41, %v1432_v17  ;;  %v1966_v32 = vmul.f32 %v3615_v33, %v3487_v48  ;;  %vm3630_vm0 = vcmp.eq.f32.partialorder %v1974_v8, 8.507059e+37  ;;  %v1977_v18 = vor.u32 1.1754944e-38, %v1976_v37  ;;  %vm1732_vm4 = vmor %vm1730_vm9, %vm1731_vm14 }
 0x13e   : > { %2597 = vrcp.f32 %v3610_v9  ;;  %2183 = vst [vmem:[%s3567_s30 + $0x10] sm:$0xff] %v3273_v46  ;;  %v1729_v5 = vadd.f32 %v3542_v35, %v1728_v16  ;;  %v1742_v60 = vsub.f32 1.0, %v1741_v4  ;;  %vm1746_vm1 = vweird.f32 %v3604_v28  ;;  %v3643_v43 = vpop.eup %2595  ;;  %v1279_v4 = vpop.f32.mrf.mxu3 }
 0x13f   : > { %vm1971_vm2 = vweird.f32 %v3615_v33  ;;  %vm1985_vm3 = vweird.f32 %v3545_v45  ;;  %2184 = vst [vmem:[%s3567_s30 + $0x18] sm:$0xff] %v3281_v6  ;;  %v1967_v46 = vsub.f32 1.0, %v1966_v32  ;;  %v1992_v17 = vor.u32 1.1754944e-38, %v1991_v39  ;;  %vm1747_vm7 = vmor %vm1745_vm12, %vm1746_vm1 }
 0x140   : > { %2599 = vpow2.f32 %v2484_v54  ;;  %v2467_v41 = vmul.f32 -1.442695, %v1399_v63  ;;  %2185 = vst [vmem:[%s3567_s30 + $0x20] sm:$0xff] %v3283_v62  ;;  %v1733_v8 = vsel %vm1732_vm4, %v3542_v35, %v1729_v5  ;;  %v1743_v37 = vmul.f32 %v3604_v28, %v1742_v60  ;;  %vm1972_vm8 = vmor %vm1970_vm13, %vm1971_vm2  ;;  %v1213_v5 = vpop.f32.mrf.mxu0 }
 0x141   : > { %v1981_v6 = vmul.f32 %v3643_v43, %v3545_v45  ;;  %vm3655_vm5 = vcmp.eq.f32.partialorder %v1989_v3, 8.507059e+37  ;;  %v2004_v34 = vand.u32 2147483647, %v3610_v9  ;;  %2186 = vst [vmem:[%s3567_s30 + $0x28] sm:$0xff] %v3376_v57  ;;  %v1738_v62 = vsel %vm3572_vm10, %v1737_v10, %v1733_v8  ;;  %v1236_v8 = vpop.f32.mrf.mxu1 }
 0x142   : > { %v1968_v35 = vmul.f32 %v3615_v33, %v1967_v46  ;;  %vm1986_vm6 = vweird.f32 %v3643_v43  ;;  %v2006_v39 = vand.u32 2147483648, %v3610_v9  ;;  %2187 = vst [vmem:[%s3567_s30 + $0x30] sm:$0xff] %v2151_v13  ;;  %v2153_v54 = vmul.f32 %v1738_v62, %v3499_v55 }
 0x143   : > { %v1744_v63 = vadd.f32 %v3604_v28, %v1743_v37  ;;  %v1982_v3 = vsub.f32 1.0, %v1981_v6  ;;  %2601 = vpow2.f32 %v2467_v41  ;;  %2188 = vst [vmem:[%s3567_s30 + $0x38] sm:$0xff] %v2152_v1  ;;  %v1400_v10 = vadd.f32 %v3002_v31, %v3548_v49  ;;  %vm1987_vm10 = vmor %vm1985_vm3, %vm1986_vm6 }
 0x144   : > { %v2598_v57 = vpop.eup %2597  ;;  %v1969_v21 = vadd.f32 %v3615_v33, %v1968_v35  ;;  %v1401_v55 = vadd.f32 %v3002_v31, %v3551_v36  ;;  %v1280_v13 = vadd.f32 %v1279_v4, %v2984_v22  ;;  %2199 = vst [vmem:[%s3567_s30 + $0x90] sm:$0xff] %v3269_v52  ;;  %vm2000_vm11 = vweird.f32 %v3610_v9 }
 0x145   : > { %v1748_v1 = vsel %vm1747_vm7, %v3604_v28, %v1744_v63  ;;  %v1983_v50 = vmul.f32 %v3643_v43, %v1982_v3  ;;  %v1996_v49 = vmul.f32 %v2598_v57, %v3610_v9  ;;  %vm2001_vm9 = vweird.f32 %v2598_v57  ;;  %2189 = vst [vmem:[%s3567_s30 + $0x40] sm:$0xff] %v2153_v54  ;;  %v1259_v3 = vpop.f32.mrf.mxu2 }
 0x146   : > { %v2600_v32 = vpop.eup %2599  ;;  %v1753_v22 = vsel %vm3621_vm15, %v3598_v61, %v1748_v1  ;;  %v1973_v28 = vsel %vm1972_vm8, %v3615_v33, %v1969_v21  ;;  %v2468_v36 = vmul.f32 -1.442695, %v1400_v10  ;;  %v2469_v52 = vmul.f32 -1.442695, %v1401_v55  ;;  %2200 = vst [vmem:[%s3567_s30 + $0x98] sm:$0xff] %v3271_v7  ;;  %vm2002_vm12 = vmor %vm2000_vm11, %vm2001_vm9 }
 0x147   : > { %v2154_v48 = vmul.f32 %v1753_v22, %v3502_v11  ;;  %v1978_v60 = vsel %vm3630_vm0, %v1977_v18, %v1973_v28  ;;  %v1984_v46 = vadd.f32 %v3643_v43, %v1983_v50  ;;  %v1997_v41 = vsub.f32 1.0, %v1996_v49  ;;  %2201 = vst [vmem:[%s3567_s30 + $0xa0] sm:$0xff] %v3381_v12 }
 0x148   : > { %v2169_v61 = vmul.f32 %v1978_v60, %v3506_v2  ;;  %v3708_v7 = vadd.f32 1.0, %v2600_v32  ;;  %2603 = vpow2.f32 %v2468_v36  ;;  %v1402_v11 = vadd.f32 %v3002_v31, %v1280_v13  ;;  %2202 = vst [vmem:[%s3567_s30 + $0xa8] sm:$0xff] %v3448_v56 }
 0x149   : > { %v2602_v33 = vpop.eup %2601  ;;  %v1988_v44 = vsel %vm1987_vm10, %v3643_v43, %v1984_v46  ;;  %v1998_v27 = vmul.f32 %v2598_v57, %v1997_v41  ;;  %2605 = vpow2.f32 %v2469_v52  ;;  %v1214_v12 = vadd.f32 %v1213_v5, %v2978_v19  ;;  %2190 = vst [vmem:[%s3567_s30 + $0x48] sm:$0xff] %v2154_v48  ;;  %v1282_v5 = vpop.f32.mrf.mxu3 }
 0x14a   : > { %v1993_v2 = vsel %vm3655_vm5, %v1992_v17, %v1988_v44  ;;  %2607 = vrcp.f32 %v3708_v7  ;;  %2203 = vst [vmem:[%s3567_s30 + $0xb0] sm:$0xff] %v3456_v14  ;;  %v3723_v18 = vadd.f32 1.0, %v2602_v33  ;;  %v2007_v19 = vor.u32 1.1754944e-38, %v2006_v39 }
 0x14b   : > { %v2170_v45 = vmul.f32 %v1993_v2, %v3510_v15  ;;  %v1999_v56 = vadd.f32 %v2598_v57, %v1998_v27  ;;  %2204 = vst [vmem:[%s3567_s30 + $0xb8] sm:$0xff] %v3478_v38  ;;  %v2470_v43 = vmul.f32 -1.442695, %v1402_v11  ;;  %v1417_v17 = vadd.f32 %v3010_v42, %v1214_v12 }
 0x14c   : > { %2205 = vst [vmem:[%s3567_s30 + $0xc0] sm:$0xff] %v2169_v61  ;;  %vm2005_vm13 = vcmp.eq.f32.partialorder %v2004_v34, 8.507059e+37  ;;  %2609 = vrcp.f32 %v3723_v18  ;;  %v2019_v38 = vand.u32 2147483647, %v3708_v7  ;;  %v2021_v6 = vand.u32 2147483648, %v3708_v7 }
 0x14d   : > { %v2003_v37 = vsel %vm2002_vm12, %v2598_v57, %v1999_v56  ;;  %2206 = vst [vmem:[%s3567_s30 + $0xc8] sm:$0xff] %v2170_v45  ;;  %2611 = vpow2.f32 %v2470_v43  ;;  %v2485_v35 = vmul.f32 -1.442695, %v1417_v17  ;;  %v1237_v9 = vadd.f32 %v1236_v8, %v2980_v20  ;;  %v1348_v27 = vpop.f32.mrf.mxu2 }
 0x14e   : > { %v2604_v14 = vpop.eup %2603  ;;  %v2008_v15 = vsel %vm2005_vm13, %v2007_v19, %v2003_v37  ;;  %v1764_v39 = vand.u32 2147483647, %v3723_v18  ;;  %vm2015_vm14 = vweird.f32 %v3708_v7  ;;  %vm3747_vm15 = vcmp.eq.f32.partialorder %v2019_v38, 8.507059e+37 }
 0x14f   : > { %v2606_v16 = vpop.eup %2605  ;;  %v2171_v4 = vmul.f32 %v2008_v15, %v3513_v59  ;;  %v3737_v62 = vadd.f32 1.0, %v2604_v14  ;;  %v2022_v57 = vor.u32 1.1754944e-38, %v2021_v6  ;;  %v1766_v20 = vand.u32 2147483648, %v3723_v18 }
 0x150   : > { %v2608_v34 = vpop.eup %2607  ;;  %v3741_v54 = vadd.f32 1.0, %v2606_v16  ;;  %vm1760_vm0 = vweird.f32 %v3723_v18  ;;  %v1418_v55 = vadd.f32 %v3010_v42, %v1237_v9  ;;  %vm3756_vm2 = vcmp.eq.f32.partialorder %v1764_v39, 8.507059e+37 }
 0x151   : > { %v2011_v63 = vmul.f32 %v2608_v34, %v3708_v7  ;;  %2613 = vrcp.f32 %v3737_v62  ;;  %2207 = vst [vmem:[%s3567_s30 + $0xd0] sm:$0xff] %v2171_v4  ;;  %vm2016_vm1 = vweird.f32 %v2608_v34  ;;  %v1779_v49 = vand.u32 2147483647, %v3737_v62 }
 0x152   : > { %2615 = vrcp.f32 %v3741_v54  ;;  %v2610_v21 = vpop.eup %2609  ;;  %v1260_v32 = vadd.f32 %v1259_v3, %v2990_v25  ;;  %v1781_v28 = vand.u32 2147483648, %v3737_v62  ;;  %v1794_v36 = vand.u32 2147483647, %v3741_v54  ;;  %vm2017_vm6 = vmor %vm2015_vm14, %vm2016_vm1 }
 0x153   : > { %v2012_v10 = vsub.f32 1.0, %v2011_v63  ;;  %2617 = vpow2.f32 %v2485_v35  ;;  %v2612_v13 = vpop.eup %2611  ;;  %v1756_v1 = vmul.f32 %v2610_v21, %v3723_v18  ;;  %v1767_v60 = vor.u32 1.1754944e-38, %v1766_v20 }
 0x154   : > { %v3764_v52 = vadd.f32 1.0, %v2612_v13  ;;  %vm1775_vm3 = vweird.f32 %v3737_v62  ;;  %v1796_v46 = vand.u32 2147483648, %v3741_v54  ;;  %vm1761_vm4 = vweird.f32 %v2610_v21 }
 0x155   : > { %v2013_v22 = vmul.f32 %v2608_v34, %v2012_v10  ;;  %v1757_v48 = vsub.f32 1.0, %v1756_v1  ;;  %vm1790_vm5 = vweird.f32 %v3741_v54  ;;  %v2486_v25 = vmul.f32 -1.442695, %v1418_v55  ;;  %vm1762_vm10 = vmor %vm1760_vm0, %vm1761_vm4  ;;  %v1325_v55 = vpop.f32.mrf.mxu1 }
 0x156   : > { %2619 = vrcp.f32 %v3764_v52  ;;  %vm3774_vm7 = vcmp.eq.f32.partialorder %v1779_v49, 8.507059e+37  ;;  %v1419_v12 = vadd.f32 %v3010_v42, %v1260_v32  ;;  %v1283_v2 = vadd.f32 %v1282_v5, %v2992_v26 }
 0x157   : > { %v2614_v41 = vpop.eup %2613  ;;  %v2014_v61 = vadd.f32 %v2608_v34, %v2013_v22  ;;  %v1758_v33 = vmul.f32 %v2610_v21, %v1757_v48  ;;  %v1782_v19 = vor.u32 1.1754944e-38, %v1781_v28  ;;  %vm3781_vm8 = vcmp.eq.f32.partialorder %v1794_v36, 8.507059e+37 }
 0x158   : > { %v2616_v11 = vpop.eup %2615  ;;  %v1771_v44 = vmul.f32 %v2614_v41, %v3737_v62  ;;  %vm1776_vm9 = vweird.f32 %v2614_v41  ;;  %2621 = vpow2.f32 %v2486_v25  ;;  %v2487_v16 = vmul.f32 -1.442695, %v1419_v12 }
 0x159   : > { %v2618_v45 = vpop.eup %2617  ;;  %v2018_v56 = vsel %vm2017_vm6, %v2608_v34, %v2014_v61  ;;  %v1786_v43 = vmul.f32 %v2616_v11, %v3741_v54  ;;  %v1759_v8 = vadd.f32 %v2610_v21, %v1758_v33  ;;  %v1420_v4 = vadd.f32 %v3010_v42, %v1283_v2  ;;  %vm1777_vm12 = vmor %vm1775_vm3, %vm1776_vm9 }
 0x15a   : > { %v2023_v7 = vsel %vm3747_vm15, %v2022_v57, %v2018_v56  ;;  %v1772_v37 = vsub.f32 1.0, %v1771_v44  ;;  %v3791_v15 = vadd.f32 1.0, %v2618_v45  ;;  %vm1791_vm11 = vweird.f32 %v2616_v11 }
 0x15b   : > { %v2172_v14 = vmul.f32 %v2023_v7, %v3516_v40  ;;  %v1787_v26 = vsub.f32 1.0, %v1786_v43  ;;  %v1763_v38 = vsel %vm1762_vm10, %v2610_v21, %v1759_v8  ;;  %v1302_v40 = vpop.f32.mrf.mxu0  ;;  %v1797_v63 = vor.u32 1.1754944e-38, %v1796_v46  ;;  %vm1792_vm14 = vmor %vm1790_vm5, %vm1791_vm11  ;;  %v1371_v8 = vpop.f32.mrf.mxu3 }
 0x15c   : > { %v1773_v6 = vmul.f32 %v2614_v41, %v1772_v37  ;;  %v2620_v35 = vpop.eup %2619  ;;  %v1768_v9 = vsel %vm3756_vm2, %v1767_v60, %v1763_v38  ;;  %2623 = vrcp.f32 %v3791_v15  ;;  %vm1805_vm13 = vweird.f32 %v3764_v52 }
 0x15d   : > { %v1788_v34 = vmul.f32 %v2616_v11, %v1787_v26  ;;  %2208 = vst [vmem:[%s3567_s30 + $0xd8] sm:$0xff] %v2172_v14  ;;  %v2155_v18 = vmul.f32 %v1768_v9, %v3519_v0  ;;  %v1801_v3 = vmul.f32 %v2620_v35, %v3764_v52  ;;  %v1809_v57 = vand.u32 2147483647, %v3764_v52 }
 0x15e   : > { %v1774_v39 = vadd.f32 %v2614_v41, %v1773_v6  ;;  %2625 = vpow2.f32 %v2487_v16  ;;  %v2488_v0 = vmul.f32 -1.442695, %v1420_v4  ;;  %v1303_v10 = vadd.f32 %v1302_v40, %v2986_v23  ;;  %v2622_v13 = vpop.eup %2621  ;;  %v4075_v40 = vld [vmem:[#allocation6_spill] sm:$0xff] }
 0x15f   : > { %v1789_v59 = vadd.f32 %v2616_v11, %v1788_v34  ;;  %v1802_v21 = vsub.f32 1.0, %v1801_v3  ;;  %2191 = vst [vmem:[%s3567_s30 + $0x50] sm:$0xff] %v2155_v18  ;;  %vm1806_vm15 = vweird.f32 %v2620_v35  ;;  %v1811_v50 = vand.u32 2147483648, %v3764_v52  ;;  %v4076_v3 = vld [vmem:[#allocation2_spill] sm:$0xff] }
 0x160   : > { %v1778_v20 = vsel %vm1777_vm12, %v2614_v41, %v1774_v39  ;;  %v3815_v22 = vadd.f32 1.0, %v2622_v13  ;;  %2627 = vpow2.f32 %v2488_v0  ;;  %v1403_v36 = vadd.f32 %v3002_v31, %v1303_v10  ;;  %vm1807_vm1 = vmor %vm1805_vm13, %vm1806_vm15 }
 0x161   : > { %v1783_v62 = vsel %vm3774_vm7, %v1782_v19, %v1778_v20  ;;  %v1793_v1 = vsel %vm1792_vm14, %v2616_v11, %v1789_v59  ;;  %v1803_v32 = vmul.f32 %v2620_v35, %v1802_v21  ;;  %v1326_v5 = vadd.f32 %v1325_v55, %v2988_v24 }
 0x162   : > { %v2156_v49 = vmul.f32 %v1783_v62, %v3522_v51  ;;  %v1798_v54 = vsel %vm3781_vm8, %v1797_v63, %v1793_v1  ;;  %v2624_v23 = vpop.eup %2623  ;;  %vm1810_vm0 = vcmp.eq.f32.partialorder %v1809_v57, 8.507059e+37  ;;  %2629 = vrcp.f32 %v3815_v22 }
 0x163   : > { %v2157_v28 = vmul.f32 %v1798_v54, %v3525_v47  ;;  %v1804_v48 = vadd.f32 %v2620_v35, %v1803_v32  ;;  %v2026_v60 = vmul.f32 %v2624_v23, %v3791_v15  ;;  %v1812_v46 = vor.u32 1.1754944e-38, %v1811_v50 }
 0x164   : > { %2192 = vst [vmem:[%s3567_s30 + $0x58] sm:$0xff] %v2156_v49  ;;  %v2626_v51 = vpop.eup %2625  ;;  %v2034_v47 = vand.u32 2147483647, %v3791_v15  ;;  %v2471_v41 = vmul.f32 -1.442695, %v1403_v36  ;;  %v1404_v11 = vadd.f32 %v3002_v31, %v1326_v5  ;;  %v2036_v44 = vand.u32 2147483648, %v3791_v15  ;;  %v1328_v36 = vpop.f32.mrf.mxu1 }
 0x165   : > { %2193 = vst [vmem:[%s3567_s30 + $0x60] sm:$0xff] %v2157_v28  ;;  %v1808_v61 = vsel %vm1807_vm1, %v2620_v35, %v1804_v48  ;;  %v2027_v25 = vsub.f32 1.0, %v2026_v60  ;;  %v3828_v24 = vadd.f32 1.0, %v2626_v51  ;;  %vm2031_vm2 = vweird.f32 %v2624_v23  ;;  %v4081_v60 = vld [vmem:[#allocation7_spill] sm:$0xff] }
 0x166   : > { %v1813_v33 = vsel %vm1810_vm0, %v1812_v46, %v1808_v61  ;;  %2631 = vpow2.f32 %v2471_v41  ;;  %v2628_v2 = vpop.eup %2627  ;;  %vm2030_vm3 = vweird.f32 %v3791_v15  ;;  %v2472_v45 = vmul.f32 -1.442695, %v1404_v11  ;;  %v1305_v15 = vpop.f32.mrf.mxu0  ;;  %v4082_v11 = vld [vmem:[#allocation3_spill] sm:$0xff] }
 0x167   : > { %v2158_v52 = vmul.f32 %v1813_v33, %v3528_v58  ;;  %v2028_v12 = vmul.f32 %v2624_v23, %v2027_v25  ;;  %2633 = vrcp.f32 %v3828_v24  ;;  %vm3835_vm4 = vcmp.eq.f32.partialorder %v2034_v47, 8.507059e+37  ;;  %vm2032_vm5 = vmor %vm2030_vm3, %vm2031_vm2 }
 0x168   : > { %v2630_v56 = vpop.eup %2629  ;;  %v3839_v17 = vadd.f32 1.0, %v2628_v2  ;;  %v1349_v7 = vadd.f32 %v1348_v27, %v2998_v29  ;;  %v2037_v58 = vor.u32 1.1754944e-38, %v2036_v44  ;;  %v2049_v14 = vand.u32 2147483647, %v3815_v22 }
 0x169   : > { %v2029_v19 = vadd.f32 %v2624_v23, %v2028_v12  ;;  %2194 = vst [vmem:[%s3567_s30 + $0x68] sm:$0xff] %v2158_v52  ;;  %v2041_v37 = vmul.f32 %v2630_v56, %v3815_v22  ;;  %v2051_v26 = vand.u32 2147483648, %v3815_v22  ;;  %v2064_v6 = vand.u32 2147483647, %v3828_v24  ;;  %v1351_v12 = vpop.f32.mrf.mxu2 }
 0x16a   : > { %v2066_v16 = vand.u32 2147483648, %v3828_v24  ;;  %2635 = vrcp.f32 %v3839_v17  ;;  %v1372_v9 = vadd.f32 %v1371_v8, %v3000_v30  ;;  %v1405_v63 = vadd.f32 %v3002_v31, %v1349_v7  ;;  %v1374_v8 = vpop.f32.mrf.mxu3 }
 0x16b   : > { %v2033_v38 = vsel %vm2032_vm5, %v2624_v23, %v2029_v19  ;;  %v2042_v35 = vsub.f32 1.0, %v2041_v37  ;;  %2637 = vpow2.f32 %v2472_v45  ;;  %v1306_v59 = vadd.f32 %v1305_v15, %v4076_v3  ;;  %v4086_v15 = vld [vmem:[#allocation4_spill] sm:$0xff] }
 0x16c   : > { %v2632_v4 = vpop.eup %2631  ;;  %v2038_v29 = vsel %vm3835_vm4, %v2037_v58, %v2033_v38  ;;  %vm2045_vm6 = vweird.f32 %v3815_v22  ;;  %vm2046_vm7 = vweird.f32 %v2630_v56  ;;  %vm3859_vm8 = vcmp.eq.f32.partialorder %v2049_v14, 8.507059e+37 }
 0x16d   : > { %v2634_v34 = vpop.eup %2633  ;;  %v2173_v18 = vmul.f32 %v2038_v29, %v4075_v40  ;;  %v3853_v39 = vadd.f32 1.0, %v2632_v4  ;;  %v2043_v57 = vmul.f32 %v2630_v56, %v2042_v35  ;;  %v2052_v30 = vor.u32 1.1754944e-38, %v2051_v26  ;;  %vm2047_vm10 = vmor %vm2045_vm6, %vm2046_vm7  ;;  %v4088_v40 = vld [vmem:[#allocation9_spill] sm:$0xff] }
 0x16e   : > { %v2056_v20 = vmul.f32 %v2634_v34, %v3828_v24  ;;  %vm2060_vm9 = vweird.f32 %v3828_v24  ;;  %v2473_v55 = vmul.f32 -1.442695, %v1405_v63  ;;  %v1406_v13 = vadd.f32 %v3002_v31, %v1372_v9  ;;  %v4087_v9 = vld [vmem:[#allocation5_spill] sm:$0xff] }
 0x16f   : > { %2639 = vrcp.f32 %v3853_v39  ;;  %2209 = vst [vmem:[%s3567_s30 + $0xe0] sm:$0xff] %v2173_v18  ;;  %v2044_v0 = vadd.f32 %v2630_v56, %v2043_v57  ;;  %vm3867_vm11 = vcmp.eq.f32.partialorder %v2064_v6, 8.507059e+37  ;;  %v2067_v50 = vor.u32 1.1754944e-38, %v2066_v16 }
 0x170   : > { %v2057_v10 = vsub.f32 1.0, %v2056_v20  ;;  %v2636_v62 = vpop.eup %2635  ;;  %v2079_v49 = vand.u32 2147483647, %v3839_v17  ;;  %v1421_v54 = vadd.f32 %v3010_v42, %v1306_v59  ;;  %vm2061_vm12 = vweird.f32 %v2634_v34 }
 0x171   : > { %v2638_v32 = vpop.eup %2637  ;;  %v2048_v22 = vsel %vm2047_vm10, %v2630_v56, %v2044_v0  ;;  %v2071_v28 = vmul.f32 %v2636_v62, %v3839_v17  ;;  %2641 = vpow2.f32 %v2473_v55  ;;  %v2474_v48 = vmul.f32 -1.442695, %v1406_v13  ;;  %vm2062_vm13 = vmor %vm2060_vm9, %vm2061_vm12  ;;  %v4085_v56 = vld [vmem:[#allocation8_spill] sm:$0xff] }
 0x172   : > { %v2058_v23 = vmul.f32 %v2634_v34, %v2057_v10  ;;  %v2053_v31 = vsel %vm3859_vm8, %v2052_v30, %v2048_v22  ;;  %v3876_v5 = vadd.f32 1.0, %v2638_v32  ;;  %v2489_v41 = vmul.f32 -1.442695, %v1421_v54 }
 0x173   : > { %v2174_v51 = vmul.f32 %v2053_v31, %v4081_v60  ;;  %v2072_v47 = vsub.f32 1.0, %v2071_v28  ;;  %vm2075_vm14 = vweird.f32 %v3839_v17  ;;  %v2081_v25 = vand.u32 2147483648, %v3839_v17 }
 0x174   : > { %v2059_v46 = vadd.f32 %v2634_v34, %v2058_v23  ;;  %2643 = vrcp.f32 %v3876_v5  ;;  %v1329_v33 = vadd.f32 %v1328_v36, %v4082_v11  ;;  %vm2076_vm15 = vweird.f32 %v2636_v62 }
 0x175   : > { %v2640_v61 = vpop.eup %2639  ;;  %v2073_v27 = vmul.f32 %v2636_v62, %v2072_v47  ;;  %2210 = vst [vmem:[%s3567_s30 + $0xe8] sm:$0xff] %v2174_v51  ;;  %vm3889_vm0 = vcmp.eq.f32.partialorder %v2079_v49, 8.507059e+37  ;;  %v1824_v45 = vand.u32 2147483647, %v3853_v39  ;;  %2645 = vpow2.f32 %v2474_v48  ;;  %vm2077_vm1 = vmor %vm2075_vm14, %vm2076_vm15 }
 0x176   : > { %v2063_v44 = vsel %vm2062_vm13, %v2634_v34, %v2059_v46  ;;  %v1816_v52 = vmul.f32 %v2640_v61, %v3853_v39  ;;  %2647 = vpow2.f32 %v2489_v41  ;;  %v2082_v37 = vor.u32 1.1754944e-38, %v2081_v25  ;;  %v4090_v41 = vld [vmem:[#allocation11_spill] sm:$0xff] }
 0x177   : > { %v2068_v2 = vsel %vm3867_vm11, %v2067_v50, %v2063_v44  ;;  %v2074_v43 = vadd.f32 %v2636_v62, %v2073_v27  ;;  %v2642_v58 = vpop.eup %2641  ;;  %v1826_v14 = vand.u32 2147483648, %v3853_v39  ;;  %v1422_v26 = vadd.f32 %v3010_v42, %v1329_v33  ;;  %v4089_v50 = vld [vmem:[#allocation10_spill] sm:$0xff] }
 0x178   : > { %v2175_v19 = vmul.f32 %v2068_v2, %v4085_v56  ;;  %v1817_v7 = vsub.f32 1.0, %v1816_v52  ;;  %v1352_v38 = vadd.f32 %v1351_v12, %v4086_v15  ;;  %vm1821_vm2 = vweird.f32 %v2640_v61 }
 0x179   : > { %v2078_v6 = vsel %vm2077_vm1, %v2636_v62, %v2074_v43  ;;  %v3900_v4 = vadd.f32 1.0, %v2642_v58  ;;  %vm1820_vm3 = vweird.f32 %v3853_v39  ;;  %v2490_v17 = vmul.f32 -1.442695, %v1422_v26 }
 0x17a   : > { %v1818_v16 = vmul.f32 %v2640_v61, %v1817_v7  ;;  %2211 = vst [vmem:[%s3567_s30 + $0xf0] sm:$0xff] %v2175_v19  ;;  %v2644_v29 = vpop.eup %2643  ;;  %v2083_v35 = vsel %vm3889_vm0, %v2082_v37, %v2078_v6  ;;  %v1375_v34 = vadd.f32 %v1374_v8, %v4087_v9  ;;  %vm1825_vm4 = vcmp.eq.f32.partialorder %v1824_v45, 8.507059e+37  ;;  %vm1822_vm5 = vmor %vm1820_vm3, %vm1821_vm2 }
 0x17b   : > { %v2176_v18 = vmul.f32 %v2083_v35, %v4088_v40  ;;  %v1831_v3 = vmul.f32 %v2644_v29, %v3876_v5  ;;  %v2646_v59 = vpop.eup %2645  ;;  %v1827_v57 = vor.u32 1.1754944e-38, %v1826_v14  ;;  %v1839_v20 = vand.u32 2147483647, %v3876_v5 }
 0x17c   : > { %v1819_v63 = vadd.f32 %v2640_v61, %v1818_v16  ;;  %2649 = vrcp.f32 %v3900_v4  ;;  %v1423_v21 = vadd.f32 %v3010_v42, %v1352_v38  ;;  %v2648_v39 = vpop.eup %2647  ;;  %v3912_v10 = vadd.f32 1.0, %v2646_v59 }
 0x17d   : > { %v1832_v0 = vsub.f32 1.0, %v1831_v3  ;;  %2651 = vpow2.f32 %v2490_v17  ;;  %2212 = vst [vmem:[%s3567_s30 + $0xf8] sm:$0xff] %v2176_v18  ;;  %v1841_v13 = vand.u32 2147483648, %v3876_v5  ;;  %v3916_v62 = vadd.f32 1.0, %v2648_v39 }
 0x17e   : > { %v1823_v30 = vsel %vm1822_vm5, %v2640_v61, %v1819_v63  ;;  %v1424_v1 = vadd.f32 %v3010_v42, %v1375_v34  ;;  %vm1836_vm6 = vweird.f32 %v2644_v29  ;;  %2653 = vrcp.f32 %v3912_v10 }
 0x17f   : > { %v1828_v55 = vsel %vm1825_vm4, %v1827_v57, %v1823_v30  ;;  %v1833_v54 = vmul.f32 %v2644_v29, %v1832_v0  ;;  %2655 = vrcp.f32 %v3916_v62  ;;  %vm1835_vm7 = vweird.f32 %v3876_v5  ;;  %v4094_v57 = vld [vmem:[#allocation13_spill] sm:$0xff]  ;;  %v4095_v30 = vld [vmem:[#allocation14_spill] sm:$0xff] }
 0x180   : > { %v2159_v49 = vmul.f32 %v1828_v55, %v4089_v50  ;;  %v2491_v22 = vmul.f32 -1.442695, %v1423_v21  ;;  %vm1837_vm8 = vmor %vm1835_vm7, %vm1836_vm6  ;;  %v1842_v28 = vor.u32 1.1754944e-38, %v1841_v13  ;;  %v2492_v36 = vmul.f32 -1.442695, %v1424_v1 }
 0x181   : > { %v1834_v32 = vadd.f32 %v2644_v29, %v1833_v54  ;;  %vm1840_vm9 = vcmp.eq.f32.partialorder %v1839_v20, 8.507059e+37  ;;  %v1854_v60 = vand.u32 2147483647, %v3900_v4  ;;  %v1856_v46 = vand.u32 2147483648, %v3900_v4 }
 0x182   : > { %2195 = vst [vmem:[%s3567_s30 + $0x70] sm:$0xff] %v2159_v49  ;;  %v2650_v23 = vpop.eup %2649  ;;  %2657 = vpow2.f32 %v2491_v22  ;;  %vm1850_vm10 = vweird.f32 %v3900_v4  ;;  %vm1865_vm13 = vweird.f32 %v3912_v10  ;;  %v1869_v45 = vand.u32 2147483647, %v3912_v10  ;;  %v4096_v22 = vld [vmem:[#allocation15_spill] sm:$0xff] }
 0x183   : > { %v2652_v31 = vpop.eup %2651  ;;  %v1838_v48 = vsel %vm1837_vm8, %v2644_v29, %v1834_v32  ;;  %v1846_v42 = vmul.f32 %v2650_v23, %v3900_v4  ;;  %2659 = vpow2.f32 %v2492_v36  ;;  %vm1851_vm11 = vweird.f32 %v2650_v23  ;;  %v4093_v29 = vld [vmem:[#allocation12_spill] sm:$0xff] }
 0x184   : > { %v1843_v51 = vsel %vm1840_vm9, %v1842_v28, %v1838_v48  ;;  %v3927_v47 = vadd.f32 1.0, %v2652_v31  ;;  %v2654_v5 = vpop.eup %2653  ;;  %vm3935_vm12 = vcmp.eq.f32.partialorder %v1854_v60, 8.507059e+37  ;;  %v1857_v12 = vor.u32 1.1754944e-38, %v1856_v46  ;;  %vm1852_vm14 = vmor %vm1850_vm10, %vm1851_vm11 }
 0x185   : > { %v2160_v61 = vmul.f32 %v1843_v51, %v4090_v41  ;;  %v1847_v25 = vsub.f32 1.0, %v1846_v42  ;;  %v2656_v11 = vpop.eup %2655  ;;  %v1861_v33 = vmul.f32 %v2654_v5, %v3912_v10  ;;  %v1871_v56 = vand.u32 2147483648, %v3912_v10 }
 0x186   : > { %2661 = vrcp.f32 %v3927_v47  ;;  %v2086_v27 = vmul.f32 %v2656_v11, %v3916_v62  ;;  %vm1866_vm15 = vweird.f32 %v2654_v5  ;;  %v2094_v8 = vand.u32 2147483647, %v3916_v62 }
 0x187   : > { %v1848_v44 = vmul.f32 %v2650_v23, %v1847_v25  ;;  %2196 = vst [vmem:[%s3567_s30 + $0x78] sm:$0xff] %v2160_v61  ;;  %v1862_v2 = vsub.f32 1.0, %v1861_v33  ;;  %v2096_v58 = vand.u32 2147483648, %v3916_v62  ;;  %vm2091_vm0 = vweird.f32 %v2656_v11  ;;  %vm1867_vm2 = vmor %vm1865_vm13, %vm1866_vm15 }
 0x188   : > { %v2087_v19 = vsub.f32 1.0, %v2086_v27  ;;  %v2658_v43 = vpop.eup %2657  ;;  %vm2090_vm1 = vweird.f32 %v3916_v62  ;;  %v1872_v17 = vor.u32 1.1754944e-38, %v1871_v56  ;;  %vm1870_vm3 = vcmp.eq.f32.partialorder %v1869_v45, 8.507059e+37 }
 0x189   : > { %v1849_v24 = vadd.f32 %v2650_v23, %v1848_v44  ;;  %v1863_v7 = vmul.f32 %v2654_v5, %v1862_v2  ;;  %v2660_v37 = vpop.eup %2659  ;;  %v1603_v15 = vadd.f32 1.0, %v2658_v43  ;;  %vm2092_vm4 = vmor %vm2090_vm1, %vm2091_vm0  ;;  %v2097_v18 = vor.u32 1.1754944e-38, %v2096_v58  ;;  %v4097_v44 = vld [vmem:[#allocation16_spill] sm:$0xff] }
 0x18a   : > { %v2088_v26 = vmul.f32 %v2656_v11, %v2087_v19  ;;  %v3947_v4 = vadd.f32 1.0, %v2660_v37  ;;  %vm2095_vm5 = vcmp.eq.f32.partialorder %v2094_v8, 8.507059e+37  ;;  %v2111_v39 = vand.u32 2147483648, %v3927_v47 }
 0x18b   : > { %v1853_v14 = vsel %vm1852_vm14, %v2650_v23, %v1849_v24  ;;  %v1864_v16 = vadd.f32 %v2654_v5, %v1863_v7  ;;  %2663 = vrcp.f32 %v1603_v15  ;;  %v2109_v55 = vand.u32 2147483647, %v3927_v47 }
 0x18c   : > { %v2662_v38 = vpop.eup %2661  ;;  %v1858_v6 = vsel %vm3935_vm12, %v1857_v12, %v1853_v14  ;;  %v2089_v9 = vadd.f32 %v2656_v11, %v2088_v26  ;;  %2665 = vrcp.f32 %v3947_v4  ;;  %vm2105_vm7 = vweird.f32 %v3927_v47 }
 0x18d   : > { %v2161_v35 = vmul.f32 %v1858_v6, %v4093_v29  ;;  %v2101_v34 = vmul.f32 %v2662_v38, %v3927_v47  ;;  %v1868_v40 = vsel %vm1867_vm2, %v2654_v5, %v1864_v16  ;;  %vm2106_vm6 = vweird.f32 %v2662_v38 }
 0x18e   : > { %v1873_v63 = vsel %vm1870_vm3, %v1872_v17, %v1868_v40  ;;  %v2093_v3 = vsel %vm2092_vm4, %v2656_v11, %v2089_v9  ;;  %vm2107_vm8 = vmor %vm2105_vm7, %vm2106_vm6  ;;  %v2112_v1 = vor.u32 1.1754944e-38, %v2111_v39  ;;  %vm2110_vm9 = vcmp.eq.f32.partialorder %v2109_v55, 8.507059e+37 }
 0x18f   : > { %v2102_v59 = vsub.f32 1.0, %v2101_v34  ;;  %2197 = vst [vmem:[%s3567_s30 + $0x80] sm:$0xff] %v2161_v35  ;;  %v2162_v20 = vmul.f32 %v1873_v63, %v4094_v57  ;;  %v2098_v21 = vsel %vm2095_vm5, %v2097_v18, %v2093_v3  ;;  %v2126_v31 = vand.u32 2147483648, %v1603_v15 }
 0x190   : > { %v2177_v0 = vmul.f32 %v2098_v21, %v4095_v30  ;;  %v2124_v42 = vand.u32 2147483647, %v1603_v15  ;;  %vm2120_vm11 = vweird.f32 %v1603_v15  ;;  %v2141_v51 = vand.u32 2147483648, %v3947_v4 }
 0x191   : > { %v2103_v10 = vmul.f32 %v2662_v38, %v2102_v59  ;;  %2198 = vst [vmem:[%s3567_s30 + $0x88] sm:$0xff] %v2162_v20  ;;  %v2664_v62 = vpop.eup %2663  ;;  %v2139_v5 = vand.u32 2147483647, %v3947_v4  ;;  %v2127_v41 = vor.u32 1.1754944e-38, %v2126_v31  ;;  %vm2135_vm15 = vweird.f32 %v3947_v4 }
 0x192   : > { %2213 = vst [vmem:[%s3567_s30 + $0x100] sm:$0xff] %v2177_v0  ;;  %v2116_v49 = vmul.f32 %v2664_v62, %v1603_v15  ;;  %v2666_v54 = vpop.eup %2665  ;;  %vm2121_vm10 = vweird.f32 %v2664_v62  ;;  %vm2125_vm14 = vcmp.eq.f32.partialorder %v2124_v42, 8.507059e+37  ;;  %v2142_v33 = vor.u32 1.1754944e-38, %v2141_v51 }
 0x193   : > { %v2104_v13 = vadd.f32 %v2662_v38, %v2103_v10  ;;  %v2131_v36 = vmul.f32 %v2666_v54, %v3947_v4  ;;  %vm2136_vm12 = vweird.f32 %v2666_v54  ;;  %vm2122_vm13 = vmor %vm2120_vm11, %vm2121_vm10  ;;  %vm2140_vm1 = vcmp.eq.f32.partialorder %v2139_v5, 8.507059e+37 }
 0x194   : > { %v2117_v28 = vsub.f32 1.0, %v2116_v49  ;;  %vm2137_vm0 = vmor %vm2135_vm15, %vm2136_vm12 }
 0x195   : > { %v2108_v50 = vsel %vm2107_vm8, %v2662_v38, %v2104_v13  ;;  %v2132_v60 = vsub.f32 1.0, %v2131_v36 }
 0x196   : > { %v2113_v32 = vsel %vm2110_vm9, %v2112_v1, %v2108_v50  ;;  %v2118_v48 = vmul.f32 %v2664_v62, %v2117_v28 }
 0x197   : > { %v2178_v23 = vmul.f32 %v2113_v32, %v4096_v22  ;;  %v2133_v47 = vmul.f32 %v2666_v54, %v2132_v60 }
 0x198   : > { %v2119_v46 = vadd.f32 %v2664_v62, %v2118_v48 }
 0x199   : > { %2214 = vst [vmem:[%s3567_s30 + $0x108] sm:$0xff] %v2178_v23  ;;  %v2134_v25 = vadd.f32 %v2666_v54, %v2133_v47 }
 0x19a   : > { %v2123_v61 = vsel %vm2122_vm13, %v2664_v62, %v2119_v46 }
 0x19b   : > { %v2128_v11 = vsel %vm2125_vm14, %v2127_v41, %v2123_v61  ;;  %v2138_v52 = vsel %vm2137_vm0, %v2666_v54, %v2134_v25 }
 0x19c   : > { %v2179_v27 = vmul.f32 %v2128_v11, %v4097_v44  ;;  %v2143_v12 = vsel %vm2140_vm1, %v2142_v33, %v2138_v52 }
 0x19d   : > { %v2180_v2 = vmul.f32 %v2143_v12, %v3602_v53 }
 0x19e   : > { %2215 = vst [vmem:[%s3567_s30 + $0x110] sm:$0xff] %v2179_v27 }
 0x19f   : > { %2216 = vst [vmem:[%s3567_s30 + $0x118] sm:$0xff] %v2180_v2 }
 0x1a0 PF: > { %s16_s23 = sadd.s32 1, %s2689_s23   ;;  %s4098_s21 = smov %s2685_s22 }
 0x1a1   : > { %p13_p5 = scmp.ge.s32.totalorder %s16_s23, 4   ;;  %s4099_s22 = smov %s4101_s24 }
 0x1a3   :  { %15 = sbr.rel (!%p13_p5) target bundleno = 2 (0x2), region = 86 }

</bundles_post_ra>
